<compile_context>
chip_gen: v6e
topology: v6e:2x2x1
jax: 0.10.0
libtpu: 0.0.40
codegen_flags: <defaults>
</compile_context>

<pallas_src>
import functools

import jax
import jax.numpy as jnp
from jax.experimental import pallas as pl
from jax.experimental.pallas import tpu as pltpu


# -----------------------------------------------------------------------------
# Kernel: one (batch, row-strip) tile.
# The fused conv3x3 + PixelUnshuffle(2) is a 2x2 "valid" conv on the
# space-to-depth input, done as a single im2col matmul.
# -----------------------------------------------------------------------------
def _conv_pixelunshuffle_kernel(xm_ref, xh_ref, w_ref, o_ref):
    # xm_ref: (1, TR,  Ws, 4*Cin)  bf16  -- TR rows of the s2d grid
    # xh_ref: (1, 1,   Ws, 4*Cin)  bf16  -- one halo row below the strip
    # w_ref : (16*Cin, 4*Cout)     bf16  -- packed weights (VMEM resident)
    # o_ref : (1, TR,  Wc, 4*Cout)       -- conv + pixel-unshuffle output
    _, tr, ws, c4 = xm_ref.shape
    wc = ws - 1

    xm = xm_ref[0]                                        # (TR, Ws, 4*Cin)
    xh = xh_ref[0]                                        # (1,  Ws, 4*Cin)
    x_hi = jnp.concatenate([xm[1:], xh], axis=0) if tr > 1 else xh

    # im2col of the 2x2 conv; tap order (a, b) matches the packed-weight
    # row-block order (a*2 + b).
    taps = [xm[:, :wc, :], xm[:, 1:, :], x_hi[:, :wc, :], x_hi[:, 1:, :]]
    col = jnp.concatenate(taps, axis=-1).reshape(tr * wc, 4 * c4)

    out = jnp.dot(col, w_ref[...], preferred_element_type=jnp.float32)
    o_ref[0] = out.reshape(tr, wc, -1).astype(o_ref.dtype)


# -----------------------------------------------------------------------------
# Weight repacking: (Cout, Cin, 3, 3) torch conv weight -> (16*Cin, 4*Cout)
#   row    = (a*2+b)*4*Cin + (p*2+q)*Cin + cin     (2x2 tap, s2d input phase)
#   column = c*4 + i*2 + j                         (PyTorch PixelUnshuffle order)
#   entry  = w[c, cin, 2a+p-i, 2b+q-j]  if both kernel offsets are in [0, 2]
#            else 0.
# -----------------------------------------------------------------------------
def _pack_weight(weight, dtype):
    Cout, Cin = weight.shape[0], weight.shape[1]
    w = weight.astype(jnp.float32)
    zero = jnp.zeros((Cin, Cout), jnp.float32)
    row_blocks = []
    for a in range(2):
        for b in range(2):
            for p in range(2):
                for q in range(2):
                    ij_blocks = []
                    for i in range(2):
                        for j in range(2):
                            kh = 2 * a + p - i
                            kw = 2 * b + q - j
                            if 0 <= kh < 3 and 0 <= kw < 3:
                                ij_blocks.append(w[:, :, kh, kw].T)   # (Cin, Cout)
                            else:
                                ij_blocks.append(zero)
                    # (Cin, Cout, 4) -> (Cin, 4*Cout); column = c*4 + i*2 + j
                    row_blocks.append(
                        jnp.stack(ij_blocks, axis=-1).reshape(Cin, 4 * Cout))
    return jnp.concatenate(row_blocks, axis=0).astype(dtype)     # (16*Cin, 4*Cout)


# -----------------------------------------------------------------------------
# Wrapper: NCHW in -> fused conv3x3 + PixelUnshuffle(2) (Pallas) -> NCHW out
# -----------------------------------------------------------------------------
def downsample(x_nchw, weight, *, tile_rows=64, compute_dtype=jnp.bfloat16,
               out_dtype=jnp.float32, vmem_limit_bytes=48 * 1024 * 1024,
               vmem_tile_budget=20 * 1024 * 1024, nchw_output=True):
    B, Cin, H, W = x_nchw.shape
    Cout = weight.shape[0]
    assert weight.shape == (Cout, Cin, 3, 3), weight.shape
    assert H % 2 == 0 and W % 2 == 0, "PixelUnshuffle(2) needs even H, W"

    Hc, Wc = H // 2, W // 2            # pixel-unshuffled spatial dims
    Ws = Wc + 1                        # s2d width incl. the 1-col conv halo
    out_itemsize = jnp.dtype(out_dtype).itemsize

    # ---- row-strip size: as large as the per-tile VMEM budget allows -------
    def tile_bytes(tr):
        in_b = (tr + 1) * Ws * 4 * Cin * 2            # main + halo blocks (bf16)
        out_b = tr * Wc * 4 * Cout * out_itemsize
        col_b = tr * Wc * 16 * Cin * 2                # im2col scratch
        acc_b = tr * Wc * 4 * Cout * 4                # f32 matmul result
        w_b = 16 * Cin * 4 * Cout * 2
        return 2 * (in_b + out_b) + col_b + acc_b + w_b   # x2: double buffering

    TR = max(1, min(tile_rows, Hc))
    while TR > 8 and tile_bytes(TR) > vmem_tile_budget:
        TR = max(8, TR // 2)
    # Prefer a strip height dividing Hc (no wasted rows); else pad minimally.
    div = next((c for c in range(TR, max(TR // 2, 1) - 1, -1) if Hc % c == 0),
               None)
    if div is not None:
        TR, nH, pad_rows = div, Hc // div, 0
    else:
        nH = -(-Hc // TR)
        TR = -(-Hc // nH)              # rebalance strips, minimize padded rows
        pad_rows = nH * TR - Hc
    Hs_p = nH * TR + 1                 # s2d rows incl. 1-row conv halo (+pad)

    # ---- one fused XLA pre-pass: NCHW->NHWC, zero halo pad, space-to-depth --
    x = jnp.transpose(x_nchw, (0, 2, 3, 1))
    xp = jnp.pad(x, ((0, 0), (1, 1 + 2 * pad_rows), (1, 1), (0, 0)))
    xs = xp.reshape(B, Hs_p, 2, Ws, 2, Cin)
    xs = jnp.transpose(xs, (0, 1, 3, 2, 4, 5)).reshape(B, Hs_p, Ws, 4 * Cin)
    xs = xs.astype(compute_dtype)

    wp = _pack_weight(weight, compute_dtype)          # (16*Cin, 4*Cout)

    flops = 2 * B * nH * TR * Wc * (16 * Cin) * (4 * Cout)
    bytes_accessed = (xs.size * xs.dtype.itemsize
                      + wp.size * wp.dtype.itemsize
                      + B * nH * TR * Wc * 4 * Cout * out_itemsize)

    conv_pu = pl.pallas_call(
        _conv_pixelunshuffle_kernel,
        out_shape=jax.ShapeDtypeStruct((B, nH * TR, Wc, 4 * Cout), out_dtype),
        grid_spec=pltpu.PrefetchScalarGridSpec(
            num_scalar_prefetch=0,
            grid=(B, nH),
            in_specs=[
                # Main TR-row window of the strip.
                pl.BlockSpec((1, TR, Ws, 4 * Cin), lambda b, i: (b, i, 0, 0)),
                # 1-row halo just below the strip, from the SAME array
                # (block size 1 => block index == element row offset).
                pl.BlockSpec((1, 1, Ws, 4 * Cin),
                             lambda b, i: (b, (i + 1) * TR, 0, 0)),
                # VMEM-resident packed weights.
                pl.BlockSpec((16 * Cin, 4 * Cout), lambda b, i: (0, 0)),
            ],
            out_specs=pl.BlockSpec((1, TR, Wc, 4 * Cout),
                                   lambda b, i: (b, i, 0, 0)),
        ),
        compiler_params=pltpu.CompilerParams(
            dimension_semantics=("parallel", "parallel"),
            vmem_limit_bytes=vmem_limit_bytes,
        ),
        cost_estimate=pl.CostEstimate(flops=flops, transcendentals=0,
                                      bytes_accessed=bytes_accessed),
    )(xs, xs, wp)

    y = conv_pu[:, :Hc]                # drop padded strip rows (if any)
    if not nchw_output:
        return y                       # (B, H/2, W/2, 2*n_feat) channels-last
    # NHWC -> NCHW to match the PyTorch module output layout (could be
    # deferred/fused into the consumer if it accepts channels-last).
    return jnp.transpose(y, (0, 3, 1, 2))


# -----------------------------------------------------------------------------
# Pure-JAX reference (for correctness check)
# -----------------------------------------------------------------------------
def downsample_reference(x_nchw, weight):
    y = jax.lax.conv_general_dilated(
        x_nchw.astype(jnp.float32), weight.astype(jnp.float32),
        window_strides=(1, 1), padding=((1, 1), (1, 1)),
        dimension_numbers=("NCHW", "OIHW", "NCHW"),
        precision=jax.lax.Precision.HIGHEST)
    B, C, H, W = y.shape
    y = y.reshape(B, C, H // 2, 2, W // 2, 2)
    y = jnp.transpose(y, (0, 1, 3, 5, 2, 4))
    return y.reshape(B, C * 4, H // 2, W // 2)


if __name__ == "__main__":
    key = jax.random.PRNGKey(0)
    kx, kw = jax.random.split(key)

    B, n_feat, H, W = 2, 64, 32, 32
    x = jax.random.normal(kx, (B, n_feat, H, W), jnp.float32)
    weight = jax.random.normal(kw, (n_feat // 2, n_feat, 3, 3), jnp.float32)
    weight = weight / (9.0 * n_feat) ** 0.5

    ref = downsample_reference(x, weight)

    # Default path: single row strip per image (grid = (B, 1)).
    out = jax.block_until_ready(jax.jit(downsample)(x, weight))
    assert out.shape == (B, 2 * n_feat, H // 2, W // 2), out.shape
    assert bool(jnp.all(jnp.isfinite(out)))
    err = float(jnp.linalg.norm(out - ref) / jnp.linalg.norm(ref))
    # bf16 activations/weights vs an f32 HIGHEST reference -> loose tolerance
    # (intentional; accumulation is f32).
    assert err < 2e-2, f"relative error too large: {err}"

    # Multi-strip path: exercises the 1-row halo BlockSpec (grid = (2, 2)).
    out2 = jax.block_until_ready(
        jax.jit(functools.partial(downsample, tile_rows=8))(x, weight))
    err2 = float(jnp.linalg.norm(out2 - ref) / jnp.linalg.norm(ref))
    assert err2 < 2e-2, f"relative error too large (tiled): {err2}"

    print("KERNEL_OK")
</pallas_src>

<mosaic_0001>
module attributes {stable_mosaic.version = 11 : i64} {
  func.func @_conv_pixelunshuffle_kernel(%arg0: i32, %arg1: i32, %arg2: memref<1x16x17x256xbf16, #tpu.memory_space<vmem>>, %arg3: memref<1x1x17x256xbf16, #tpu.memory_space<vmem>>, %arg4: memref<1024x128xbf16, #tpu.memory_space<vmem>>, %arg5: memref<1x16x16x128xf32, #tpu.memory_space<vmem>>) attributes {dimension_semantics = [#tpu.dimension_semantics<parallel>, #tpu.dimension_semantics<parallel>], iteration_bounds = array<i64: 2, 1>, scalar_prefetch = 0 : i64, scratch_operands = 0 : i64, tpu.core_type = #tpu.core_type<tc>, window_params = [{transform_indices = @transform_0, window_bounds = array<i64: 1, 16, 17, 256>}, {transform_indices = @transform_1, window_bounds = array<i64: 1, 1, 17, 256>}, {pipeline_mode = #tpu.pipeline_mode<synchronous>, transform_indices = @transform_2, window_bounds = array<i64: 1024, 128>}, {transform_indices = @transform_3, window_bounds = array<i64: 1, 16, 16, 128>}]} {
    %c0 = arith.constant 0 : index
    %c0_0 = arith.constant 0 : index
    %c0_1 = arith.constant 0 : index
    %c0_2 = arith.constant 0 : index
    %0 = vector.load %arg2[%c0, %c0_0, %c0_1, %c0_2] : memref<1x16x17x256xbf16, #tpu.memory_space<vmem>>, vector<1x16x17x256xbf16>
    %1 = vector.shape_cast %0 : vector<1x16x17x256xbf16> to vector<16x17x256xbf16>
    %c0_3 = arith.constant 0 : index
    %c0_4 = arith.constant 0 : index
    %c0_5 = arith.constant 0 : index
    %c0_6 = arith.constant 0 : index
    %2 = vector.load %arg3[%c0_3, %c0_4, %c0_5, %c0_6] : memref<1x1x17x256xbf16, #tpu.memory_space<vmem>>, vector<1x1x17x256xbf16>
    %3 = vector.shape_cast %2 : vector<1x1x17x256xbf16> to vector<1x17x256xbf16>
    %4 = vector.extract_strided_slice %1 {offsets = [1, 0, 0], sizes = [15, 17, 256], strides = [1, 1, 1]} : vector<16x17x256xbf16> to vector<15x17x256xbf16>
    %5 = tpu.concatenate %4, %3 in 0 : vector<15x17x256xbf16>, vector<1x17x256xbf16> -> vector<16x17x256xbf16>
    %6 = vector.extract_strided_slice %1 {offsets = [0, 0, 0], sizes = [16, 16, 256], strides = [1, 1, 1]} : vector<16x17x256xbf16> to vector<16x16x256xbf16>
    %7 = vector.extract_strided_slice %1 {offsets = [0, 1, 0], sizes = [16, 16, 256], strides = [1, 1, 1]} : vector<16x17x256xbf16> to vector<16x16x256xbf16>
    %8 = vector.extract_strided_slice %5 {offsets = [0, 0, 0], sizes = [16, 16, 256], strides = [1, 1, 1]} : vector<16x17x256xbf16> to vector<16x16x256xbf16>
    %9 = vector.extract_strided_slice %5 {offsets = [0, 1, 0], sizes = [16, 16, 256], strides = [1, 1, 1]} : vector<16x17x256xbf16> to vector<16x16x256xbf16>
    %10 = tpu.concatenate %6, %7, %8, %9 in 2 : vector<16x16x256xbf16>, vector<16x16x256xbf16>, vector<16x16x256xbf16>, vector<16x16x256xbf16> -> vector<16x16x1024xbf16>
    %11 = vector.shape_cast %10 : vector<16x16x1024xbf16> to vector<256x1024xbf16>
    %c0_7 = arith.constant 0 : index
    %c0_8 = arith.constant 0 : index
    %12 = vector.load %arg4[%c0_7, %c0_8] : memref<1024x128xbf16, #tpu.memory_space<vmem>>, vector<1024x128xbf16>
    %cst = arith.constant dense<0.000000e+00> : vector<256x128xf32>
    %13 = tpu.matmul %11, %12, %cst {dimension_numbers = #tpu.dot_dimension_numbers<[1], [0], [0], [1], [0, 0, 1, 1], [], []>} : vector<256x1024xbf16>, vector<1024x128xbf16>, vector<256x128xf32> -> vector<256x128xf32>
    %14 = vector.shape_cast %13 : vector<256x128xf32> to vector<16x16x128xf32>
    %c0_9 = arith.constant 0 : index
    %c0_10 = arith.constant 0 : index
    %c0_11 = arith.constant 0 : index
    %c0_12 = arith.constant 0 : index
    %15 = vector.load %arg5[%c0_9, %c0_10, %c0_11, %c0_12] : memref<1x16x16x128xf32, #tpu.memory_space<vmem>>, vector<1x16x16x128xf32>
    %16 = vector.shape_cast %15 : vector<1x16x16x128xf32> to vector<16x16x128xf32>
    %17 = vector.shape_cast %14 : vector<16x16x128xf32> to vector<1x16x16x128xf32>
    tpu.vector_store %arg5[%c0_9, %c0_10, %c0_11, %c0_12], %17 {strides = array<i32>} : memref<1x16x16x128xf32, #tpu.memory_space<vmem>>, vector<1x16x16x128xf32>,
    return
  }
  func.func @transform_0(%arg0: i32, %arg1: i32) -> (i32, i32, i32, i32) {
    %c0_i32 = arith.constant 0 : i32
    %c0_i32_0 = arith.constant 0 : i32
    %c0_i32_1 = arith.constant 0 : i32
    return %arg0, %arg1, %c0_i32, %c0_i32_0 : i32, i32, i32, i32
  }
  func.func @transform_1(%arg0: i32, %arg1: i32) -> (i32, i32, i32, i32) {
    %c1_i32 = arith.constant 1 : i32
    %0 = arith.addi %arg1, %c1_i32 : i32
    %c16_i32 = arith.constant 16 : i32
    %1 = arith.muli %0, %c16_i32 : i32
    %c0_i32 = arith.constant 0 : i32
    %c0_i32_0 = arith.constant 0 : i32
    %c0_i32_1 = arith.constant 0 : i32
    return %arg0, %1, %c0_i32, %c0_i32_0 : i32, i32, i32, i32
  }
  func.func @transform_2(%arg0: i32, %arg1: i32) -> (i32, i32) {
    %c0_i32 = arith.constant 0 : i32
    %c0_i32_0 = arith.constant 0 : i32
    %c0_i32_1 = arith.constant 0 : i32
    return %c0_i32, %c0_i32_0 : i32, i32
  }
  func.func @transform_3(%arg0: i32, %arg1: i32) -> (i32, i32, i32, i32) {
    %c0_i32 = arith.constant 0 : i32
    %c0_i32_0 = arith.constant 0 : i32
    %c0_i32_1 = arith.constant 0 : i32
    return %arg0, %arg1, %c0_i32, %c0_i32_0 : i32, i32, i32, i32
  }
}

</mosaic_0001>

<bundles_post_ra>
// kernel: downsample.1
= control target key start
LH: loop header
LB: loop body
LE: loop exit
PB: predicated region body
PF: predicated region fallthrough
CT: control target
= control target key end

     0   :  { %8 = vsyncpa [#allocation3], 0  ;;  %s4085_s0 = inlined_call_operand.vmem [shape: bf16[2,17,17,256], index: 0, kind: input, shape index: {}, may-alias: {0,1}]   ;;  %s4086_s1 = inlined_call_operand.vmem [shape: bf16[2,17,17,256], index: 1, kind: input, shape index: {}, may-alias: {0,1}]   ;;  %s4087_s2 = inlined_call_operand.vmem [shape: bf16[1024,128], index: 2, kind: input, shape index: {}]   ;;  %s4088_s3 = inlined_call_operand.hbm [shape: f32[2,16,16,128], index: 3, kind: output, shape index: {}]  }
   0x1   :  { %10 = vsyncpa [#allocation3 + $0x1], 0  ;;  %s3245_s12 = smov 0   ;;  %s3247_s13 = smov 0  }
   0x2   :  { %s3249_s14 = smov 0   ;;  %s3251_s15 = smov 0  }
   0x3   :  { %s3253_s16 = smov 0   ;;  %s3255_s17 = smov 0  }
   0x4 LB: > { %s2339_s18 = sadd.s32 4294967295, %s3220_s17   ;;  %s2340_s19 = sadd.s32 4294967294, %s3220_s17   ;;  %s3220_s17 = sphi %s3255_s17, %s16_s17   ;;  %s3216_s16 = sphi %s3253_s16, %s4125_s16   ;;  %s3212_s15 = sphi %s3251_s15, %s4124_s15   ;;  %s3208_s14 = sphi %s3249_s14, %s4123_s14   ;;  %s3204_s13 = sphi %s3247_s13, %s4122_s13   ;;  %s3200_s12 = sphi %s3245_s12, %s4121_s12  }
   0x5   : > { %s28_s20 = sadd.s32 1, %s3216_s16  ;;  %s118_s21 = sadd.s32 1, %s3208_s14 }
   0x6   : > { %p30_p0 = scmp.ge.s32.totalorder %s28_s20, 2  ;;  %p128_p1 = scmp.ne.s32.totalorder %s3208_s14, %s3204_s13 }
   0x7   : > { %p129_p2 = scmp.eq.s32.totalorder %s2339_s18, 1  ;;  %p134_p3 = scmp.ne.s32.totalorder %s3204_s13, %s3200_s12 }
   0x8   : > { %s4127_s20 = smov (%p30_p0, %s28_s20), 0  ;;  %p135_p5 = scmp.eq.s32.totalorder %s2340_s19, 1 }
   0x9   : > { %p3285_p4 = por %p129_p2, %p128_p1  ;;  %s113_s23 = ssub.s32 %s3216_s16, %s4127_s20 }
   0xa   : > { %p2343_p6 = scmp.ge.s32.totalorder %s3220_s17, 1  ;;  %p116_p7 = scmp.eq.s32.totalorder %s113_s23, 0 }
   0xb   : > { %p3292_p8 = por %p135_p5, %p134_p3  ;;  %p198_p9 = scmp.lt.s32.totalorder %s3220_s17, 3 }
   0xc   : > { %s3298_s25 = scalar_select %p116_p7, %s3208_s14, %s118_s21  }
   0xd   : > { %p199_p10 = pnand %p2343_p6, %p198_p9 }
   0xf   : > { %202 = sbr.rel (%p199_p10) target bundleno = 521 (0x209), region = 32 }
  0x14   : > { %v2995_v0 = vld [vmem:[%s4087_s2 + $0x78] sm:$0xff]   ;;  %p251_p11 = scmp.lt.s32.totalorder %s3212_s15, 1  ;;  %v2999_v4 = vld [vmem:[%s4087_s2 + $0x70] sm:$0xff]   ;;  %v3003_v8 = vld [vmem:[%s4087_s2 + $0x68] sm:$0xff]   ;;  %vm573_vm0 = vsmask.f32 7424 }
  0x15   : > { %v2996_v1 = vld [vmem:[%s4087_s2 + $0xf8] sm:$0xff]   ;;  %2487 = vmatprep.subr.bf16.mxu0 %v2995_v0  ;;  %v3000_v5 = vld [vmem:[%s4087_s2 + $0xf0] sm:$0xff]   ;;  %v3004_v9 = vld [vmem:[%s4087_s2 + $0xe8] sm:$0xff]   ;;  %s2486_s28 = sshll.u32 %s3212_s15, 12  ;;  %s3222_s9 = smov [#allocation2]  }
  0x16   : > { %v2997_v2 = vld [vmem:[%s4087_s2 + $0x38] sm:$0xff]   ;;  %2599 = vmatprep.subr.bf16.mxu1 %v2996_v1  ;;  %s3314_s7 = scalar_select %p251_p11, %s3212_s15, 1  ;;  %v3001_v6 = vld [vmem:[%s4087_s2 + $0x30] sm:$0xff]   ;;  %v3005_v10 = vld [vmem:[%s4087_s2 + $0x28] sm:$0xff]  }
  0x17   : > { %v2998_v3 = vld [vmem:[%s4087_s2 + $0xb8] sm:$0xff]   ;;  %2488 = vmatpush3.bf16.msra.mxu0 %v2997_v2  ;;  %v3002_v7 = vld [vmem:[%s4087_s2 + $0xb0] sm:$0xff]   ;;  %v3006_v11 = vld [vmem:[%s4087_s2 + $0xa8] sm:$0xff]   ;;  %s4033_s6 = scalar_lea.hbm %s4088_s3, %s2486_s28  ;;  %s3148_s10 = sshll.u32 %s3222_s9, 4  ;;  %s3149_s10 = int_to_ptr.vmem [resolvable:$false] %s3148_s10 }
  0x18   : > { %2600 = vmatpush3.bf16.msra.mxu1 %v2998_v3  ;;  %2489 = vmatprep.subr.bf16.mxu0 %v2999_v4  ;;  %v3007_v12 = vld [vmem:[%s4087_s2 + $0x60] sm:$0xff]   ;;  %v3011_v16 = vld [vmem:[%s4087_s2 + $0x58] sm:$0xff]   ;;  %v3015_v20 = vld [vmem:[%s4087_s2 + $0x50] sm:$0xff]   ;;  %s2935_s30 = smul.u32 408, %s3314_s7  ;;  %s241_s7 = sand.u32 1, %s3204_s13  }
  0x19   : > { %2601 = vmatprep.subr.bf16.mxu1 %v3000_v5  ;;  %v3008_v13 = vld [vmem:[%s4087_s2 + $0xe0] sm:$0xff]   ;;  %v3012_v17 = vld [vmem:[%s4087_s2 + $0xd8] sm:$0xff]   ;;  %v3016_v21 = vld [vmem:[%s4087_s2 + $0xd0] sm:$0xff]   ;;  %s4040_s8 = scalar_lea.sflag [#allocation3], %s241_s7  ;;  %s3150_s11 = scalar_lea.vmem %s3149_s10, 8192 }
  0x1a   : > { %v3009_v14 = vld [vmem:[%s4087_s2 + $0x20] sm:$0xff]   ;;  %v3013_v18 = vld [vmem:[%s4087_s2 + $0x18] sm:$0xff]   ;;  %v3017_v22 = vld [vmem:[%s4087_s2 + $0x10] sm:$0xff]   ;;  %s3400_s23 = scalar_lea.vmem %s4085_s0, %s2935_s30 }
  0x1b   : > { %2490 = vmatpush3.bf16.msra.mxu0 %v3001_v6  ;;  %v3010_v15 = vld [vmem:[%s4087_s2 + $0xa0] sm:$0xff]   ;;  %v3014_v19 = vld [vmem:[%s4087_s2 + $0x98] sm:$0xff]   ;;  %v3018_v23 = vld [vmem:[%s4087_s2 + $0x90] sm:$0xff]  }
  0x1c   : > { %2602 = vmatpush3.bf16.msra.mxu1 %v3002_v7  ;;  %2491 = vmatprep.subr.bf16.mxu0 %v3003_v8  ;;  %v3019_v24 = vld [vmem:[%s4087_s2 + $0x48] sm:$0xff]   ;;  %v3023_v28 = vld [vmem:[%s4087_s2 + $0x40] sm:$0xff]   ;;  %v284_v33 = vld [vmem:[%s3400_s23 + $0x10] sm:$0x11] }
  0x1d   : > { %2603 = vmatprep.subr.bf16.mxu1 %v3004_v9  ;;  %v3020_v25 = vld [vmem:[%s4087_s2 + $0xc8] sm:$0xff]   ;;  %v3024_v29 = vld [vmem:[%s4087_s2 + $0xc0] sm:$0xff]   ;;  %v2380_v35 = vcombine.high %v284_v33, %v284_v33  ;;  %v2379_v38 = vcombine.low %v284_v33, %v284_v33  ;;  %v3032_v39 = vld [vmem:[%s4087_s2 + $0x178] sm:$0xff]  }
  0x1e   : > { %v3021_v26 = vld [vmem:[%s4087_s2 + $0x8] sm:$0xff]   ;;  %v3025_v30 = vld [vmem:[%s4087_s2] sm:$0xff]   ;;  %v3033_v40 = vld [vmem:[%s4087_s2 + $0x138] sm:$0xff]  }
  0x1f   : > { %2492 = vmatpush3.bf16.msra.mxu0 %v3005_v10  ;;  %v3022_v27 = vld [vmem:[%s4087_s2 + $0x88] sm:$0xff]   ;;  %v3026_v31 = vld [vmem:[%s4087_s2 + $0x80] sm:$0xff]   ;;  %v594_v44 = vshll.u32 %v2380_v35, 16  ;;  %v582_v45 = vshll.u32 %v2379_v38, 16  ;;  %v3034_v46 = vld [vmem:[%s4087_s2 + $0x1f8] sm:$0xff]  }
  0x20   : > { %2604 = vmatpush3.bf16.msra.mxu1 %v3006_v11  ;;  %2493 = vmatprep.subr.bf16.mxu0 %v3007_v12  ;;  %v3027_v32 = vld [vmem:[%s3400_s23 + $0x4] ss:$8 sps:$4 sm:$0xff]   ;;  %v3030_v34 = vld [vmem:[%s3400_s23] ss:$8 sps:$4 sm:$0xff]   ;;  %v3035_v48 = vld [vmem:[%s4087_s2 + $0x1b8] sm:$0xff]  }
  0x21   : > { %2605 = vmatprep.subr.bf16.mxu1 %v3008_v13  ;;  %1575 = vmatprep.mubr.bf16.mxu0 %v3027_v32  ;;  %v587_v36 = vshrl.u32 %v3027_v32, 16  ;;  %v589_v37 = vshll.u32 %v3027_v32, 16  ;;  %v577_v41 = vshll.u32 %v3030_v34, 16  ;;  %v575_v42 = vshrl.u32 %v3030_v34, 16  ;;  %v3424_v53 = vld [vmem:[%s3400_s23 + $0x1c] ss:$8 sps:$4 sm:$0xff]  }
  0x22   : > { %v596_v50 = vrot.slane %v594_v44, 1  ;;  %v584_v51 = vrot.slane %v582_v45, 1  ;;  %v287_v54 = vld [vmem:[%s3400_s23 + $0x28] sm:$0x11]  ;;  %v3428_v55 = vld [vmem:[%s3400_s23 + $0x18] ss:$8 sps:$4 sm:$0xff]  }
  0x23   : > { %2494 = vmatpush3.bf16.msra.mxu0 %v3009_v14  ;;  %v591_v43 = vrot.slane %v589_v37, 1  ;;  %v579_v47 = vrot.slane %v577_v41, 1  ;;  %v2382_v57 = vcombine.high %v287_v54, %v287_v54  ;;  %v2381_v58 = vcombine.low %v287_v54, %v287_v54  ;;  %v3432_v59 = vld [vmem:[%s3400_s23 + $0x34] ss:$8 sps:$4 sm:$0xff]   ;;  %v290_v0 = vld [vmem:[%s3400_s23 + $0x40] sm:$0x11] }
  0x24   : > { %2606 = vmatpush3.bf16.msra.mxu1 %v3010_v15  ;;  %2495 = vmatprep.subr.bf16.mxu0 %v3011_v16  ;;  %v611_v61 = vshrl.u32 %v3424_v53, 16  ;;  %v613_v62 = vshll.u32 %v3424_v53, 16  ;;  %v599_v63 = vshrl.u32 %v3428_v55, 16  ;;  %v3046_v1 = vld [vmem:[%s4087_s2 + $0x170] sm:$0xff]   ;;  %v601_v3 = vshll.u32 %v3428_v55, 16  ;;  %v3060_v37 = vld [vmem:[%s4087_s2 + $0x168] sm:$0xff]  }
  0x25   : > { %2607 = vmatprep.subr.bf16.mxu1 %v3012_v17  ;;  %v592_v49 = vor.u32 %v591_v43, %v587_v36  ;;  %v580_v52 = vor.u32 %v579_v47, %v575_v42  ;;  %v618_v2 = vshll.u32 %v2382_v57, 16  ;;  %v606_v4 = vshll.u32 %v2381_v58, 16  ;;  %v3445_v6 = vld [vmem:[%s3400_s23 + $0x30] ss:$8 sps:$4 sm:$0xff]   ;;  %v3483_v36 = vld [vmem:[%s3400_s23 + $0x64] ss:$8 sps:$4 sm:$0xff]  }
  0x26   : > { %v2384_v5 = vcombine.high %v290_v0, %v290_v0  ;;  %v3047_v7 = vld [vmem:[%s4087_s2 + $0x130] sm:$0xff]   ;;  %v615_v8 = vrot.slane %v613_v62, 1  ;;  %v635_v9 = vshrl.u32 %v3432_v59, 16  ;;  %v637_v10 = vshll.u32 %v3432_v59, 16  ;;  %v3063_v54 = vld [vmem:[%s4087_s2 + $0x1a8] sm:$0xff]  }
  0x27   : > { %2496 = vmatpush3.bf16.msra.mxu0 %v3013_v18  ;;  %v597_v56 = vsel %vm573_vm0, %v592_v49, %v596_v50  ;;  %v585_v60 = vsel %vm573_vm0, %v580_v52, %v584_v51  ;;  %v2383_v11 = vcombine.low %v290_v0, %v290_v0  ;;  %v3048_v12 = vld [vmem:[%s4087_s2 + $0x1f0] sm:$0xff]   ;;  %v620_v13 = vrot.slane %v618_v2, 1  ;;  %v3062_v49 = vld [vmem:[%s4087_s2 + $0x1e8] sm:$0xff]  }
  0x28   : > { %2608 = vmatpush3.bf16.msra.mxu1 %v3014_v19  ;;  %2497 = vmatprep.subr.bf16.mxu0 %v3015_v20  ;;  %v603_v14 = vrot.slane %v601_v3, 1  ;;  %v608_v15 = vrot.slane %v606_v4, 1  ;;  %v642_v16 = vshll.u32 %v2384_v5, 16  ;;  %v616_v17 = vor.u32 %v615_v8, %v611_v61  ;;  %v3477_v32 = vld [vmem:[%s3400_s23 + $0x48] ss:$8 sps:$4 sm:$0xff]  }
  0x29   : > { %2609 = vmatprep.subr.bf16.mxu1 %v3016_v21  ;;  %1736 = vmatprep.mubr.bf16.mxu1 %v597_v56  ;;  %v639_v18 = vrot.slane %v637_v10, 1  ;;  %v623_v19 = vshrl.u32 %v3445_v6, 16  ;;  %v625_v20 = vshll.u32 %v3445_v6, 16  ;;  %v3049_v21 = vld [vmem:[%s4087_s2 + $0x1b0] sm:$0xff]   ;;  %v649_v41 = vshll.u32 %v3477_v32, 16 }
  0x2a   : > { %v296_v42 = vld [vmem:[%s3400_s23 + $0x70] sm:$0x11]  ;;  %v647_v47 = vshrl.u32 %v3477_v32, 16  ;;  %v3502_v52 = vld [vmem:[%s3400_s23 + $0x60] ss:$8 sps:$4 sm:$0xff]  }
  0x2b   : > { %2498 = vmatpush3.bf16.msra.mxu0 %v3017_v22  ;;  %v604_v22 = vor.u32 %v603_v14, %v599_v63  ;;  %v2388_v45 = vcombine.high %v296_v42, %v296_v42  ;;  %v651_v57 = vrot.slane %v649_v41, 1  ;;  %v2387_v0 = vcombine.low %v296_v42, %v296_v42  ;;  %v299_v2 = vld [vmem:[%s3400_s23 + $0x88] sm:$0x11]  ;;  %v3529_v14 = vld [vmem:[%s3400_s23 + $0x78] ss:$8 sps:$4 sm:$0xff]  }
  0x2c   : > { %2610 = vmatpush3.bf16.msra.mxu1 %v3018_v23  ;;  %2499 = vmatprep.subr.bf16.mxu0 %v3019_v24  ;;  %v644_v23 = vrot.slane %v642_v16, 1  ;;  %v630_v24 = vshll.u32 %v2383_v11, 16  ;;  %v673_v5 = vshll.u32 %v3502_v52, 16  ;;  %v671_v11 = vshrl.u32 %v3502_v52, 16  ;;  %v3559_v42 = vld [vmem:[%s3400_s23 + $0x90] ss:$8 sps:$4 sm:$0xff]  }
  0x2d   : > { %2611 = vmatprep.subr.bf16.mxu1 %v3020_v25  ;;  %v3463_v25 = vsel %vm573_vm0, %v616_v17, %v620_v13  ;;  %v690_v63 = vshll.u32 %v2388_v45, 16  ;;  %v652_v3 = vor.u32 %v651_v57, %v647_v47  ;;  %v678_v13 = vshll.u32 %v2387_v0, 16 }
  0x2e   : > { %v675_v17 = vrot.slane %v673_v5, 1  ;;  %v3091_v5 = vld [vmem:[%s4087_s2 + $0x198] sm:$0xff]  }
  0x2f   : > { %2500 = vmatpush3.bf16.msra.mxu0 %v3021_v26  ;;  %v640_v26 = vor.u32 %v639_v18, %v635_v9  ;;  %v692_v8 = vrot.slane %v690_v63, 1  ;;  %v2390_v9 = vcombine.high %v299_v2, %v299_v2  ;;  %v3538_v18 = vld [vmem:[%s3400_s23 + $0x94] ss:$8 sps:$4 sm:$0xff]  }
  0x30   : > { %2612 = vmatpush3.bf16.msra.mxu1 %v3022_v27  ;;  %2501 = vmatprep.subr.bf16.mxu0 %v3023_v28  ;;  %v627_v27 = vrot.slane %v625_v20, 1  ;;  %v3467_v28 = vsel %vm573_vm0, %v604_v22, %v608_v15  ;;  %v3075_v15 = vld [vmem:[%s4087_s2 + $0x120] sm:$0xff]   ;;  %v3090_v63 = vld [vmem:[%s4087_s2 + $0x1d8] sm:$0xff]  }
  0x31   : > { %2613 = vmatprep.subr.bf16.mxu1 %v3024_v29  ;;  %v3470_v29 = vld [vmem:[%s3400_s23 + $0x4c] ss:$8 sps:$4 sm:$0xff]  }
  0x32   : > { %v661_v35 = vshll.u32 %v3470_v29, 16  ;;  %v628_v38 = vor.u32 %v627_v27, %v623_v19  ;;  %v3076_v19 = vld [vmem:[%s4087_s2 + $0x1e0] sm:$0xff]   ;;  %v2389_v27 = vcombine.low %v299_v2, %v299_v2 }
  0x33   : > { %2502 = vmatpush3.bf16.msra.mxu0 %v3025_v30  ;;  %v3473_v30 = vsel %vm573_vm0, %v640_v26, %v644_v23  ;;  %v714_v23 = vshll.u32 %v2390_v9, 16  ;;  %v302_v26 = vld [vmem:[%s3400_s23 + $0xa0] sm:$0x11] }
  0x34   : > { %2614 = vmatpush3.bf16.msra.mxu1 %v3026_v31  ;;  %2711 = vmatprep.subr.bf16.mxu0 %v3032_v39  ;;  %v293_v31 = vld [vmem:[%s3400_s23 + $0x58] sm:$0x11]  ;;  %v632_v39 = vrot.slane %v630_v24, 1  ;;  %v663_v43 = vrot.slane %v661_v35, 1  ;;  %v3077_v24 = vld [vmem:[%s4087_s2 + $0x1a0] sm:$0xff]   ;;  %v702_v41 = vshll.u32 %v2389_v27, 16  ;;  %v2391_v57 = vcombine.low %v302_v26, %v302_v26 }
  0x35   : > { %2823 = vmatprep.subr.bf16.mxu1 %v3034_v46  ;;  %v2386_v33 = vcombine.high %v293_v31, %v293_v31  ;;  %v3061_v46 = vld [vmem:[%s4087_s2 + $0x128] sm:$0xff]  }
  0x36   : > { %1576 = vmatmul.mubr.bf16.vlgmr.msra.gmra.mxu0 %v3030_v34  ;;  %v659_v34 = vshrl.u32 %v3470_v29, 16  ;;  %v3508_v56 = vsel %vm573_vm0, %v628_v38, %v632_v39  ;;  %v2392_v38 = vcombine.high %v302_v26, %v302_v26  ;;  %v733_v39 = vshll.u32 %v3538_v18, 16 }
  0x37   : > { %2712 = vmatpush3.bf16.msra.mxu0 %v3033_v40  ;;  %1583 = vmatprep.mubr.bf16.mxu0 %v3424_v53  ;;  %v2385_v40 = vcombine.low %v293_v31, %v293_v31  ;;  %v666_v44 = vshll.u32 %v2386_v33, 16  ;;  %v676_v31 = vor.u32 %v675_v17, %v671_v11  ;;  %v680_v33 = vrot.slane %v678_v13, 1  ;;  %v3599_v13 = vld [vmem:[%s3400_s23 + $0xc4] ss:$8 sps:$4 sm:$0xff]  }
  0x38   : > { %1737 = vmatmul.mubr.bf16.vlgmr.msra.gmra.mxu1 %v585_v60  ;;  %2713 = vmatprep.subr.bf16.mxu0 %v3046_v1  ;;  %v664_v50 = vor.u32 %v663_v43, %v659_v34  ;;  %v683_v60 = vshrl.u32 %v3483_v36, 16  ;;  %v3516_v1 = vld [vmem:[%s3400_s23 + $0x7c] ss:$8 sps:$4 sm:$0xff]   ;;  %v697_v34 = vshll.u32 %v3529_v14, 16 }
  0x39   : > { %2824 = vmatpush3.bf16.msra.mxu1 %v3035_v48  ;;  %1744 = vmatprep.mubr.bf16.mxu1 %v3463_v25  ;;  %v685_v48 = vshll.u32 %v3483_v36, 16  ;;  %v668_v51 = vrot.slane %v666_v44, 1  ;;  %v654_v58 = vshll.u32 %v2385_v40, 16  ;;  %v709_v10 = vshll.u32 %v3516_v1, 16  ;;  %v3088_v43 = vld [vmem:[%s4087_s2 + $0x158] sm:$0xff]  }
  0x3a   : > { %2825 = vmatprep.subr.bf16.mxu1 %v3048_v12  ;;  %v3074_v12 = vld [vmem:[%s4087_s2 + $0x160] sm:$0xff]   ;;  %v695_v40 = vshrl.u32 %v3529_v14, 16  ;;  %v3565_v44 = vsel %vm573_vm0, %v676_v31, %v680_v33  ;;  %v699_v45 = vrot.slane %v697_v34, 1  ;;  %v3103_v33 = vld [vmem:[%s4087_s2 + $0x110] sm:$0xff]  }
  0x3b   : > { %2714 = vmatpush3.bf16.msra.mxu0 %v3047_v7  ;;  %v3512_v61 = vsel %vm573_vm0, %v664_v50, %v668_v51  ;;  %v687_v62 = vrot.slane %v685_v48, 1  ;;  %v656_v4 = vrot.slane %v654_v58, 1  ;;  %v711_v22 = vrot.slane %v709_v10, 1  ;;  %v3572_v50 = vld [vmem:[%s3400_s23 + $0xac] ss:$8 sps:$4 sm:$0xff]  }
  0x3c   : > { %2715 = vmatprep.subr.bf16.mxu0 %v3060_v37  ;;  %v716_v37 = vrot.slane %v714_v23, 1  ;;  %v735_v48 = vrot.slane %v733_v39, 1  ;;  %v305_v51 = vld [vmem:[%s3400_s23 + $0xb8] sm:$0x11]  ;;  %v700_v58 = vor.u32 %v699_v45, %v695_v40  ;;  %v755_v11 = vshrl.u32 %v3572_v50, 16  ;;  %v3104_v34 = vld [vmem:[%s4087_s2 + $0x1d0] sm:$0xff]  }
  0x3d   : > { %2826 = vmatpush3.bf16.msra.mxu1 %v3049_v21  ;;  %v688_v7 = vor.u32 %v687_v62, %v683_v60  ;;  %v3535_v16 = vsel %vm573_vm0, %v652_v3, %v656_v4  ;;  %v707_v21 = vshrl.u32 %v3516_v1, 16  ;;  %v704_v60 = vrot.slane %v702_v41, 1  ;;  %v3105_v39 = vld [vmem:[%s4087_s2 + $0x190] sm:$0xff]  }
  0x3e   : > { %1584 = vmatmul.mubr.bf16.gmra.mxu0 %v3428_v55  ;;  %2827 = vmatprep.subr.bf16.mxu1 %v3062_v49  ;;  %v738_v49 = vshll.u32 %v2392_v38, 16  ;;  %v721_v62 = vshll.u32 %v3559_v42, 16  ;;  %v2394_v3 = vcombine.high %v305_v51, %v305_v51  ;;  %v757_v4 = vshll.u32 %v3572_v50, 16 }
  0x3f   : > { %1591 = vmatprep.mubr.bf16.mxu0 %v3432_v59  ;;  %2716 = vmatpush3.bf16.msra.mxu0 %v3061_v46  ;;  %v3544_v20 = vsel %vm573_vm0, %v688_v7, %v692_v8  ;;  %v712_v35 = vor.u32 %v711_v22, %v707_v21  ;;  %v731_v46 = vshrl.u32 %v3538_v18, 16  ;;  %v719_v7 = vshrl.u32 %v3559_v42, 16  ;;  %v308_v21 = vld [vmem:[%s3400_s23 + $0xd0] sm:$0x11] }
  0x40   : > { %1745 = vmatmul.mubr.bf16.gmra.mxu1 %v3467_v28  ;;  %2717 = vmatprep.subr.bf16.mxu0 %v3074_v12  ;;  %v740_v2 = vrot.slane %v738_v49, 1  ;;  %v726_v8 = vshll.u32 %v2391_v57, 16  ;;  %v3592_v9 = vsel %vm573_vm0, %v700_v58, %v704_v60  ;;  %v723_v10 = vrot.slane %v721_v62, 1  ;;  %v3596_v12 = vld [vmem:[%s3400_s23 + $0xa8] ss:$8 sps:$4 sm:$0xff]  }
  0x41   : > { %1752 = vmatprep.mubr.bf16.mxu1 %v3473_v30  ;;  %2828 = vmatpush3.bf16.msra.mxu1 %v3063_v54  ;;  %v3569_v47 = vsel %vm573_vm0, %v712_v35, %v716_v37  ;;  %v3089_v54 = vld [vmem:[%s4087_s2 + $0x118] sm:$0xff]   ;;  %v736_v0 = vor.u32 %v735_v48, %v731_v46  ;;  %v759_v17 = vrot.slane %v757_v4, 1  ;;  %v3102_v22 = vld [vmem:[%s4087_s2 + $0x150] sm:$0xff]   ;;  %v2393_v23 = vcombine.low %v305_v51, %v305_v51  ;;  %v3628_v48 = vld [vmem:[%s3400_s23 + $0xc0] ss:$8 sps:$4 sm:$0xff]  }
  0x42   : > { %2829 = vmatprep.subr.bf16.mxu1 %v3076_v19  ;;  %v762_v19 = vshll.u32 %v2394_v3, 16  ;;  %v728_v26 = vrot.slane %v726_v8, 1  ;;  %v745_v27 = vshll.u32 %v3596_v12, 16  ;;  %v2396_v31 = vcombine.high %v308_v21, %v308_v21  ;;  %v3635_v58 = vld [vmem:[%s3400_s23 + $0xdc] ss:$8 sps:$4 sm:$0xff]  }
  0x43   : > { %2718 = vmatpush3.bf16.msra.mxu0 %v3075_v15  ;;  %v3602_v15 = vsel %vm573_vm0, %v736_v0, %v740_v2  ;;  %v760_v35 = vor.u32 %v759_v17, %v755_v11  ;;  %v781_v38 = vshll.u32 %v3599_v13, 16  ;;  %v750_v40 = vshll.u32 %v2393_v23, 16  ;;  %v311_v60 = vld [vmem:[%s3400_s23 + $0xe8] sm:$0x11]  ;;  %v3652_v17 = vld [vmem:[%s3400_s23 + $0xd8] ss:$8 sps:$4 sm:$0xff]  }
  0x44   : > { %2719 = vmatprep.subr.bf16.mxu0 %v3088_v43  ;;  %v764_v37 = vrot.slane %v762_v19, 1  ;;  %v743_v43 = vshrl.u32 %v3596_v12, 16  ;;  %v747_v45 = vrot.slane %v745_v27, 1  ;;  %v786_v46 = vshll.u32 %v2396_v31, 16  ;;  %v3117_v11 = vld [vmem:[%s4087_s2 + $0x108] sm:$0xff]  }
  0x45   : > { %2830 = vmatpush3.bf16.msra.mxu1 %v3077_v24  ;;  %v724_v24 = vor.u32 %v723_v10, %v719_v7  ;;  %v779_v51 = vshrl.u32 %v3599_v13, 16  ;;  %v2395_v57 = vcombine.low %v308_v21, %v308_v21  ;;  %v752_v62 = vrot.slane %v750_v40, 1  ;;  %v3116_v10 = vld [vmem:[%s4087_s2 + $0x148] sm:$0xff]   ;;  %v3655_v19 = vld [vmem:[%s3400_s23 + $0xf4] ss:$8 sps:$4 sm:$0xff]  }
  0x46   : > { %1592 = vmatmul.mubr.bf16.gmra.mxu0 %v3445_v6  ;;  %2831 = vmatprep.subr.bf16.mxu1 %v3090_v63  ;;  %v3631_v49 = vsel %vm573_vm0, %v760_v35, %v764_v37  ;;  %v767_v63 = vshrl.u32 %v3628_v48, 16  ;;  %v748_v0 = vor.u32 %v747_v45, %v743_v43  ;;  %v788_v2 = vrot.slane %v786_v46, 1  ;;  %v314_v21 = vld [vmem:[%s3400_s23 + $0x100] sm:$0x11]  ;;  %v3119_v27 = vld [vmem:[%s4087_s2 + $0x188] sm:$0xff]  }
  0x47   : > { %1599 = vmatprep.mubr.bf16.mxu0 %v3470_v29  ;;  %2720 = vmatpush3.bf16.msra.mxu0 %v3089_v54  ;;  %v3624_v41 = vsel %vm573_vm0, %v724_v24, %v728_v26  ;;  %v783_v54 = vrot.slane %v781_v38, 1  ;;  %v769_v3 = vshll.u32 %v3628_v48, 16  ;;  %v2398_v7 = vcombine.high %v311_v60, %v311_v60  ;;  %v3118_v26 = vld [vmem:[%s4087_s2 + $0x1c8] sm:$0xff]  }
  0x48   : > { %1753 = vmatmul.mubr.bf16.gmra.mxu1 %v3508_v56  ;;  %2721 = vmatprep.subr.bf16.mxu0 %v3102_v22  ;;  %v805_v8 = vshll.u32 %v3635_v58, 16  ;;  %v3659_v22 = vsel %vm573_vm0, %v748_v0, %v752_v62  ;;  %v803_v24 = vshrl.u32 %v3635_v58, 16  ;;  %v2397_v35 = vcombine.low %v311_v60, %v311_v60  ;;  %v3131_v60 = vld [vmem:[%s4087_s2 + $0x100] sm:$0xff]  }
  0x49   : > { %1760 = vmatprep.mubr.bf16.mxu1 %v3512_v61  ;;  %2832 = vmatpush3.bf16.msra.mxu1 %v3091_v5  ;;  %v784_v4 = vor.u32 %v783_v54, %v779_v51  ;;  %v774_v5 = vshll.u32 %v2395_v57, 16  ;;  %v771_v23 = vrot.slane %v769_v3, 1  ;;  %v793_v37 = vshll.u32 %v3652_v17, 16  ;;  %v3130_v51 = vld [vmem:[%s4087_s2 + $0x140] sm:$0xff]   ;;  %v3682_v57 = vld [vmem:[%s3400_s23 + $0xf0] ss:$8 sps:$4 sm:$0xff]  }
  0x4a   : > { %2833 = vmatprep.subr.bf16.mxu1 %v3104_v34  ;;  %v810_v34 = vshll.u32 %v2398_v7, 16  ;;  %v2400_v40 = vcombine.high %v314_v21, %v314_v21  ;;  %v829_v46 = vshll.u32 %v3655_v19, 16  ;;  %v791_v54 = vshrl.u32 %v3652_v17, 16  ;;  %v3133_v7 = vld [vmem:[%s4087_s2 + $0x180] sm:$0xff]  }
  0x4b   : > { %2722 = vmatpush3.bf16.msra.mxu0 %v3103_v33  ;;  %v3669_v31 = vsel %vm573_vm0, %v784_v4, %v788_v2  ;;  %v807_v33 = vrot.slane %v805_v8, 1  ;;  %v772_v38 = vor.u32 %v771_v23, %v767_v63  ;;  %v795_v62 = vrot.slane %v793_v37, 1  ;;  %v3132_v2 = vld [vmem:[%s4087_s2 + $0x1c0] sm:$0xff]  }
  0x4c   : > { %2723 = vmatprep.subr.bf16.mxu0 %v3116_v10  ;;  %v812_v45 = vrot.slane %v810_v34, 1  ;;  %v798_v63 = vshll.u32 %v2397_v35, 16  ;;  %v827_v0 = vshrl.u32 %v3655_v19, 16  ;;  %v834_v4 = vshll.u32 %v2400_v40, 16 }
  0x4d   : > { %2834 = vmatpush3.bf16.msra.mxu1 %v3105_v39  ;;  %v776_v39 = vrot.slane %v774_v5, 1  ;;  %v808_v43 = vor.u32 %v807_v33, %v803_v24  ;;  %v3695_v5 = vld [vmem:[%s3400_s23 + $0x10c] ss:$8 sps:$4 sm:$0xff]   ;;  %v831_v10 = vrot.slane %v829_v46, 1  ;;  %v796_v23 = vor.u32 %v795_v62, %v791_v54 }
  0x4e   : > { %1600 = vmatmul.mubr.bf16.gmra.mxu0 %v3477_v32  ;;  %2835 = vmatprep.subr.bf16.mxu1 %v3118_v26  ;;  %v800_v24 = vrot.slane %v798_v63, 1  ;;  %v2399_v26 = vcombine.low %v314_v21, %v314_v21  ;;  %v836_v34 = vrot.slane %v834_v4, 1  ;;  %v853_v37 = vshll.u32 %v3695_v5, 16  ;;  %v320_v62 = vld [vmem:[%s3400_s23 + $0x130] sm:$0x11] }
  0x4f   : > { %1607 = vmatprep.mubr.bf16.mxu0 %v3483_v36  ;;  %2724 = vmatpush3.bf16.msra.mxu0 %v3117_v11  ;;  %v3692_v3 = vsel %vm573_vm0, %v772_v38, %v776_v39  ;;  %v3701_v8 = vsel %vm573_vm0, %v808_v43, %v812_v45  ;;  %v317_v11 = vld [vmem:[%s3400_s23 + $0x118] sm:$0x11]  ;;  %v832_v33 = vor.u32 %v831_v10, %v827_v0  ;;  %v815_v39 = vshrl.u32 %v3682_v57, 16  ;;  %v3715_v45 = vld [vmem:[%s3400_s23 + $0x108] ss:$8 sps:$4 sm:$0xff]  }
  0x50   : > { %1761 = vmatmul.mubr.bf16.gmra.mxu1 %v3535_v16  ;;  %2725 = vmatprep.subr.bf16.mxu0 %v3130_v51  ;;  %v2402_v35 = vcombine.high %v317_v11, %v317_v11  ;;  %v3711_v38 = vsel %vm573_vm0, %v796_v23, %v800_v24  ;;  %v822_v43 = vshll.u32 %v2399_v26, 16  ;;  %4101 = vst [vmem:[#allocation5_spill] sm:$0xff] %v3715_v45  ;;  %v851_v46 = vshrl.u32 %v3695_v5, 16 }
  0x51   : > { %1768 = vmatprep.mubr.bf16.mxu1 %v3544_v20  ;;  %2836 = vmatpush3.bf16.msra.mxu1 %v3119_v27  ;;  %v817_v27 = vshll.u32 %v3682_v57, 16  ;;  %v3718_v21 = vsel %vm573_vm0, %v832_v33, %v836_v34  ;;  %v855_v51 = vrot.slane %v853_v37, 1  ;;  %v841_v4 = vshll.u32 %v3715_v45, 16 }
  0x52   : > { %2837 = vmatprep.subr.bf16.mxu1 %v3132_v2  ;;  %v858_v54 = vshll.u32 %v2402_v35, 16  ;;  %v824_v0 = vrot.slane %v822_v43, 1  ;;  %v2401_v2 = vcombine.low %v317_v11, %v317_v11  ;;  %v2404_v23 = vcombine.high %v320_v62, %v320_v62  ;;  %v3736_v35 = vld [vmem:[%s3400_s23 + $0x120] ss:$8 sps:$4 sm:$0xff]   ;;  %v3743_v43 = vld [vmem:[%s3400_s23 + $0x13c] ss:$8 sps:$4 sm:$0xff]  }
  0x53   : > { %2726 = vmatpush3.bf16.msra.mxu0 %v3131_v60  ;;  %v819_v40 = vrot.slane %v817_v27, 1  ;;  %v3722_v60 = vld [vmem:[%s3400_s23 + $0x124] ss:$8 sps:$4 sm:$0xff]   ;;  %v839_v27 = vshrl.u32 %v3715_v45, 16  ;;  %v843_v33 = vrot.slane %v841_v4, 1  ;;  %4104 = vst [vmem:[#allocation8_spill] sm:$0xff] %v3736_v35 }
  0x54   : > { %4102 = vst [vmem:[#allocation6_spill] sm:$0xff] %v3722_v60  ;;  %v860_v10 = vrot.slane %v858_v54, 1  ;;  %v877_v24 = vshll.u32 %v3722_v60, 16  ;;  %v846_v34 = vshll.u32 %v2401_v2, 16  ;;  %v875_v37 = vshrl.u32 %v3722_v60, 16  ;;  %4106 = vst [vmem:[#allocation10_spill] sm:$0xff] %v3743_v43 }
  0x55   : > { %2838 = vmatpush3.bf16.msra.mxu1 %v3133_v7  ;;  %v820_v63 = vor.u32 %v819_v40, %v815_v39  ;;  %v856_v7 = vor.u32 %v855_v51, %v851_v46  ;;  %v882_v40 = vshll.u32 %v2404_v23, 16  ;;  %v323_v46 = vld [vmem:[%s3400_s23 + $0x148] sm:$0x11]  ;;  %v844_v51 = vor.u32 %v843_v33, %v839_v27  ;;  %v3757_v33 = vld [vmem:[%s3400_s23 + $0x138] ss:$8 sps:$4 sm:$0xff]  }
  0x56   : > { %1608 = vmatmul.mubr.bf16.gmra.mxu0 %v3502_v52  ;;  %v879_v39 = vrot.slane %v877_v24, 1  ;;  %v848_v54 = vrot.slane %v846_v34, 1  ;;  %v863_v24 = vshrl.u32 %v3736_v35, 16  ;;  %v899_v34 = vshrl.u32 %v3743_v43, 16 }
  0x57   : > { %1615 = vmatprep.mubr.bf16.mxu0 %v3516_v1  ;;  %v3732_v26 = vsel %vm573_vm0, %v820_v63, %v824_v0  ;;  %v3739_v11 = vsel %vm573_vm0, %v856_v7, %v860_v10  ;;  %v2403_v63 = vcombine.low %v320_v62, %v320_v62  ;;  %v865_v0 = vshll.u32 %v3736_v35, 16 }
  0x58   : > { %1769 = vmatmul.mubr.bf16.gmra.mxu1 %v3565_v44  ;;  %4103 = vst [vmem:[#allocation7_spill] sm:$0xff] %v3732_v26  ;;  %4105 = vst [vmem:[#allocation9_spill] sm:$0xff] %v3739_v11  ;;  %v880_v2 = vor.u32 %v879_v39, %v875_v37  ;;  %v884_v4 = vrot.slane %v882_v40, 1  ;;  %v2406_v7 = vcombine.high %v323_v46, %v323_v46  ;;  %v901_v10 = vshll.u32 %v3743_v43, 16  ;;  %v3764_v39 = vld [vmem:[%s3400_s23 + $0x154] ss:$8 sps:$4 sm:$0xff]  }
  0x59   : > { %1776 = vmatprep.mubr.bf16.mxu1 %v3569_v47  ;;  %v3753_v23 = vsel %vm573_vm0, %v844_v51, %v848_v54  ;;  %v870_v27 = vshll.u32 %v2403_v63, 16  ;;  %v326_v40 = vld [vmem:[%s3400_s23 + $0x160] sm:$0x11]  ;;  %v2405_v63 = vcombine.low %v323_v46, %v323_v46 }
  0x5a   : > { %4107 = vst [vmem:[#allocation11_spill] sm:$0xff] %v3753_v23  ;;  %v3760_v62 = vsel %vm573_vm0, %v880_v2, %v884_v4  ;;  %v906_v37 = vshll.u32 %v2406_v7, 16  ;;  %v2408_v7 = vcombine.high %v326_v40, %v326_v40 }
  0x5b   : > { %4108 = vst [vmem:[#allocation12_spill] sm:$0xff] %v3760_v62  ;;  %v872_v54 = vrot.slane %v870_v27, 1  ;;  %v923_v27 = vshrl.u32 %v3764_v39, 16 }
  0x5c   : > { %v908_v4 = vrot.slane %v906_v37, 1  ;;  %v329_v37 = vld [vmem:[%s3400_s23 + $0x178] sm:$0x11] }
  0x5e   : > { %1616 = vmatmul.mubr.bf16.gmra.mxu0 %v3529_v14 }
  0x5f   : > { %1623 = vmatprep.mubr.bf16.mxu0 %v3538_v18 }
  0x60   : > { %1777 = vmatmul.mubr.bf16.gmra.mxu1 %v3592_v9 }
  0x61   : > { %1784 = vmatprep.mubr.bf16.mxu1 %v3602_v15 }
  0x66   : > { %1624 = vmatmul.mubr.bf16.gmra.mxu0 %v3559_v42 }
  0x67   : > { %1631 = vmatprep.mubr.bf16.mxu0 %v3572_v50 }
  0x68   : > { %1785 = vmatmul.mubr.bf16.gmra.mxu1 %v3624_v41 }
  0x69   : > { %1792 = vmatprep.mubr.bf16.mxu1 %v3631_v49 }
  0x6e   : > { %1632 = vmatmul.mubr.bf16.gmra.mxu0 %v3596_v12 }
  0x6f   : > { %1639 = vmatprep.mubr.bf16.mxu0 %v3599_v13 }
  0x70   : > { %1793 = vmatmul.mubr.bf16.gmra.mxu1 %v3659_v22 }
  0x71   : > { %1800 = vmatprep.mubr.bf16.mxu1 %v3669_v31 }
  0x76   : > { %1640 = vmatmul.mubr.bf16.gmra.mxu0 %v3628_v48 }
  0x77   : > { %1647 = vmatprep.mubr.bf16.mxu0 %v3635_v58 }
  0x78   : > { %1801 = vmatmul.mubr.bf16.gmra.mxu1 %v3692_v3 }
  0x79   : > { %1808 = vmatprep.mubr.bf16.mxu1 %v3701_v8 }
  0x7e   : > { %1648 = vmatmul.mubr.bf16.gmra.mxu0 %v3652_v17 }
  0x7f   : > { %1655 = vmatprep.mubr.bf16.mxu0 %v3655_v19 }
  0x80   : > { %1809 = vmatmul.mubr.bf16.gmra.mxu1 %v3711_v38 }
  0x81   : > { %1816 = vmatprep.mubr.bf16.mxu1 %v3718_v21 }
  0x86   : > { %1656 = vmatmul.mubr.bf16.gmra.mxu0 %v3682_v57 }
  0x87   : > { %1663 = vmatprep.mubr.bf16.mxu0 %v3695_v5 }
  0x88   : > { %1817 = vmatmul.mubr.bf16.gmra.mxu1 %v3732_v26 }
  0x89   : > { %1824 = vmatprep.mubr.bf16.mxu1 %v3739_v11 }
  0x8e   : > { %1664 = vmatmul.mubr.bf16.gmra.mxu0 %v3715_v45  ;;  %v867_v45 = vrot.slane %v865_v0, 1  ;;  %v889_v0 = vshll.u32 %v3757_v33, 16 }
  0x8f   : > { %1671 = vmatprep.mubr.bf16.mxu0 %v3722_v60  ;;  %v903_v60 = vrot.slane %v901_v10, 1  ;;  %v925_v10 = vshll.u32 %v3764_v39, 16 }
  0x90   : > { %1825 = vmatmul.mubr.bf16.gmra.mxu1 %v3753_v23  ;;  %v868_v51 = vor.u32 %v867_v45, %v863_v24  ;;  %v894_v45 = vshll.u32 %v2405_v63, 16  ;;  %v3778_v24 = vld [vmem:[%s3400_s23 + $0x150] ss:$8 sps:$4 sm:$0xff]   ;;  %v2407_v63 = vcombine.low %v326_v40, %v326_v40 }
  0x91   : > { %1832 = vmatprep.mubr.bf16.mxu1 %v3760_v62  ;;  %v904_v2 = vor.u32 %v903_v60, %v899_v34  ;;  %v887_v62 = vshrl.u32 %v3757_v33, 16  ;;  %v930_v60 = vshll.u32 %v2408_v7, 16  ;;  %v3785_v34 = vld [vmem:[%s3400_s23 + $0x16c] ss:$8 sps:$4 sm:$0xff]   ;;  %v2410_v7 = vcombine.high %v329_v37, %v329_v37 }
  0x92   : > { %v3774_v23 = vsel %vm573_vm0, %v868_v51, %v872_v54  ;;  %v896_v54 = vrot.slane %v894_v45, 1  ;;  %v918_v26 = vshll.u32 %v2407_v63, 16  ;;  %v947_v40 = vshrl.u32 %v3785_v34, 16 }
  0x93   : > { %4109 = vst [vmem:[#allocation13_spill] sm:$0xff] %v3774_v23  ;;  %v3781_v46 = vsel %vm573_vm0, %v904_v2, %v908_v4  ;;  %v932_v4 = vrot.slane %v930_v60, 1  ;;  %v954_v45 = vshll.u32 %v2410_v7, 16 }
  0x94   : > { %4110 = vst [vmem:[#allocation14_spill] sm:$0xff] %v3781_v46  ;;  %v920_v60 = vrot.slane %v918_v26, 1 }
  0x96   : > { %1672 = vmatmul.mubr.bf16.gmra.mxu0 %v3736_v35  ;;  %v891_v35 = vrot.slane %v889_v0, 1  ;;  %v913_v0 = vshll.u32 %v3778_v24, 16 }
  0x97   : > { %1679 = vmatprep.mubr.bf16.mxu0 %v3743_v43  ;;  %v927_v43 = vrot.slane %v925_v10, 1  ;;  %v949_v10 = vshll.u32 %v3785_v34, 16 }
  0x98   : > { %1833 = vmatmul.mubr.bf16.gmra.mxu1 %v3774_v23  ;;  %v892_v51 = vor.u32 %v891_v35, %v887_v62  ;;  %v911_v23 = vshrl.u32 %v3778_v24, 16  ;;  %v3799_v35 = vld [vmem:[%s3400_s23 + $0x168] ss:$8 sps:$4 sm:$0xff]   ;;  %s2485_s23 = sadd.s32 384, %s2935_s30  ;;  %s2344_s30 = sshll.u32 %s241_s7, 8 }
  0x99   : > { %1840 = vmatprep.mubr.bf16.mxu1 %v3781_v46  ;;  %v928_v2 = vor.u32 %v927_v43, %v923_v27  ;;  %v915_v46 = vrot.slane %v913_v0, 1  ;;  %v951_v43 = vrot.slane %v949_v10, 1  ;;  %v956_v0 = vrot.slane %v954_v45, 1  ;;  %s3819_s26 = scalar_lea.vmem %s4086_s1, %s2485_s23  ;;  %v4117_v45 = vld [vmem:[#allocation8_spill] sm:$0xff]  ;;  %s3965_s27 = scalar_lea.vmem [#allocation2], %s2344_s30 }
  0x9a   : > { %v3795_v11 = vsel %vm573_vm0, %v892_v51, %v896_v54  ;;  %v2409_v51 = vcombine.low %v329_v37, %v329_v37  ;;  %v937_v54 = vshll.u32 %v3799_v35, 16  ;;  %s2236_s29 = sshll.u32 %s3965_s27, 4  ;;  %s4035_s29 = int_to_ptr.vmem [resolvable:$true] %s2236_s29 }
  0x9b   : > { %v3802_v62 = vsel %vm573_vm0, %v928_v2, %v932_v4  ;;  %v916_v27 = vor.u32 %v915_v46, %v911_v23  ;;  %v952_v63 = vor.u32 %v951_v43, %v947_v40  ;;  %v935_v4 = vshrl.u32 %v3799_v35, 16  ;;  %v4116_v40 = vld [vmem:[#allocation12_spill] sm:$0xff]  ;;  %s3144_s15 = scalar_lea.vmem %s4035_s29, 4096  ;;  %p3151_p1 = scmp.lt.s32.totalorder %s4035_s29, %s3149_s10 }
  0x9c   : > { %v939_v7 = vrot.slane %v937_v54, 1  ;;  %v942_v10 = vshll.u32 %v2409_v51, 16  ;;  %p3145_p12 = scmp.ne.s32.totalorder %s4035_s29, %s3144_s15  ;;  %p3152_p2 = scmp.lt.s32.totalorder %s3150_s11, %s3144_s15 }
  0x9d   : > { %v3813_v2 = vsel %vm573_vm0, %v916_v27, %v920_v60  ;;  %v3822_v26 = vsel %vm573_vm0, %v952_v63, %v956_v0  ;;  %v4118_v60 = vld [vmem:[#allocation10_spill] sm:$0xff] }
  0x9e   : > { %1680 = vmatmul.mubr.bf16.gmra.mxu0 %v3757_v33  ;;  %v940_v23 = vor.u32 %v939_v7, %v935_v4  ;;  %v944_v46 = vrot.slane %v942_v10, 1  ;;  %p3146_p13 = pnand %p3145_p12, %p3285_p4  ;;  %p3153_p3 = por %p3152_p2, %p3151_p1 }
  0x9f   : > { %1687 = vmatprep.mubr.bf16.mxu0 %v3764_v39 }
  0xa0   : > { %1841 = vmatmul.mubr.bf16.gmra.mxu1 %v3795_v11  ;;  %v3829_v37 = vsel %vm573_vm0, %v940_v23, %v944_v46  ;;  %p3147_p0 = pneg %p3146_p13 }
  0xa1   : > { %1848 = vmatprep.mubr.bf16.mxu1 %v3802_v62 }
  0xa2   : > { %p3154_p5 = pnand %p3153_p3, %p3147_p0 }
  0xa6   : > { %1688 = vmatmul.mubr.bf16.gmra.mxu0 %v3778_v24 }
  0xa7   : > { %1695 = vmatprep.mubr.bf16.mxu0 %v3785_v34 }
  0xa8   : > { %1849 = vmatmul.mubr.bf16.gmra.mxu1 %v3813_v2 }
  0xa9   : > { %1856 = vmatprep.mubr.bf16.mxu1 %v3822_v26 }
  0xae   : > { %1696 = vmatmul.mubr.bf16.gmra.mxu0 %v3799_v35 }
  0xaf   : > { %1897 = vmatprep.mubr.bf16.mxu0 %v3424_v53 }
  0xb0   : > { %1857 = vmatmul.mubr.bf16.gmra.mxu1 %v3829_v37 }
  0xb1   : > { %2058 = vmatprep.mubr.bf16.mxu1 %v3463_v25 }
  0xb6   : > { %1898 = vmatmul.mubr.bf16.vlgmr.msra.gmra.mxu0 %v3428_v55 }
  0xb7   : > { %1905 = vmatprep.mubr.bf16.mxu0 %v3432_v59 }
  0xb8   : > { %2059 = vmatmul.mubr.bf16.vlgmr.msra.gmra.mxu1 %v3467_v28 }
  0xb9   : > { %2066 = vmatprep.mubr.bf16.mxu1 %v3473_v30 }
  0xbe   : > { %1906 = vmatmul.mubr.bf16.gmra.mxu0 %v3445_v6 }
  0xbf   : > { %1913 = vmatprep.mubr.bf16.mxu0 %v3470_v29 }
  0xc0   : > { %2067 = vmatmul.mubr.bf16.gmra.mxu1 %v3508_v56 }
  0xc1   : > { %2074 = vmatprep.mubr.bf16.mxu1 %v3512_v61 }
  0xc6   : > { %1914 = vmatmul.mubr.bf16.gmra.mxu0 %v3477_v32 }
  0xc7   : > { %1921 = vmatprep.mubr.bf16.mxu0 %v3483_v36 }
  0xc8   : > { %2075 = vmatmul.mubr.bf16.gmra.mxu1 %v3535_v16 }
  0xc9   : > { %2082 = vmatprep.mubr.bf16.mxu1 %v3544_v20 }
  0xce   : > { %1922 = vmatmul.mubr.bf16.gmra.mxu0 %v3502_v52 }
  0xcf   : > { %1929 = vmatprep.mubr.bf16.mxu0 %v3516_v1 }
  0xd0   : > { %2083 = vmatmul.mubr.bf16.gmra.mxu1 %v3565_v44  ;;  %v4111_v44 = vld [vmem:[#allocation7_spill] sm:$0xff] }
  0xd1   : > { %2090 = vmatprep.mubr.bf16.mxu1 %v3569_v47 }
  0xd6   : > { %1930 = vmatmul.mubr.bf16.gmra.mxu0 %v3529_v14 }
  0xd7   : > { %1937 = vmatprep.mubr.bf16.mxu0 %v3538_v18 }
  0xd8   : > { %2091 = vmatmul.mubr.bf16.gmra.mxu1 %v3592_v9  ;;  %v4112_v9 = vld [vmem:[#allocation9_spill] sm:$0xff] }
  0xd9   : > { %2098 = vmatprep.mubr.bf16.mxu1 %v3602_v15 }
  0xde   : > { %1938 = vmatmul.mubr.bf16.gmra.mxu0 %v3559_v42 }
  0xdf   : > { %1945 = vmatprep.mubr.bf16.mxu0 %v3572_v50 }
  0xe0   : > { %2099 = vmatmul.mubr.bf16.gmra.mxu1 %v3624_v41  ;;  %v4114_v41 = vld [vmem:[#allocation6_spill] sm:$0xff] }
  0xe1   : > { %2106 = vmatprep.mubr.bf16.mxu1 %v3631_v49 }
  0xe6   : > { %1946 = vmatmul.mubr.bf16.gmra.mxu0 %v3596_v12 }
  0xe7   : > { %1953 = vmatprep.mubr.bf16.mxu0 %v3599_v13  ;;  %v4113_v13 = vld [vmem:[#allocation5_spill] sm:$0xff] }
  0xe8   : > { %2107 = vmatmul.mubr.bf16.gmra.mxu1 %v3659_v22 }
  0xe9   : > { %2114 = vmatprep.mubr.bf16.mxu1 %v3669_v31 }
  0xee   : > { %1954 = vmatmul.mubr.bf16.gmra.mxu0 %v3628_v48 }
  0xef   : > { %1961 = vmatprep.mubr.bf16.mxu0 %v3635_v58 }
  0xf0   : > { %2115 = vmatmul.mubr.bf16.gmra.mxu1 %v3692_v3 }
  0xf1   : > { %2122 = vmatprep.mubr.bf16.mxu1 %v3701_v8  ;;  %v4115_v8 = vld [vmem:[#allocation11_spill] sm:$0xff] }
  0xf6   : > { %v2503_v53 = vpop.f32.mrf.mxu0  ;;  %1962 = vmatmul.mubr.bf16.gmra.mxu0 %v3652_v17 }
  0xf7   : > { %1969 = vmatprep.mubr.bf16.mxu0 %v3655_v19 }
  0xf8   : > { %v2504_v55 = vpop.f32.mrf.mxu0  ;;  %v2615_v28 = vpop.f32.mrf.mxu1  ;;  %2123 = vmatmul.mubr.bf16.gmra.mxu1 %v3711_v38 }
  0xf9   : > { %v2505_v59 = vadd.f32 %v2504_v55, %v2503_v53  ;;  %2130 = vmatprep.mubr.bf16.mxu1 %v3718_v21  ;;  %v4119_v55 = vld [vmem:[#allocation13_spill] sm:$0xff] }
  0xfa   : > { %v2506_v6 = vpop.f32.mrf.mxu0  ;;  %v2616_v32 = vpop.f32.mrf.mxu1 }
  0xfb   : > { %v2617_v36 = vadd.f32 %v2616_v32, %v2615_v28 }
  0xfc   : > { %v2507_v25 = vpop.f32.mrf.mxu0  ;;  %v2618_v56 = vpop.f32.mrf.mxu1 }
  0xfd   : > { %v2508_v29 = vadd.f32 %v2507_v25, %v2506_v6  ;;  %v3871_v1 = vadd.f32 %v2617_v36, %v2505_v59  ;;  %v4120_v25 = vld [vmem:[#allocation14_spill] sm:$0xff] }
  0xfe   : > { %v2509_v30 = vpop.f32.mrf.mxu0  ;;  %1970 = vmatmul.mubr.bf16.gmra.mxu0 %v3682_v57  ;;  %v2619_v16 = vpop.f32.mrf.mxu1 }
  0xff   : > { %1977 = vmatprep.mubr.bf16.mxu0 %v3695_v5  ;;  %v2620_v18 = vadd.f32 %v2619_v16, %v2618_v56  ;;  %v3141_v16 = vld [vmem:[%s3819_s26 + $0x4] ss:$8 sps:$4 sm:$0xff]  }
 0x100   : > { %v2510_v52 = vpop.f32.mrf.mxu0  ;;  %v2621_v42 = vpop.f32.mrf.mxu1  ;;  %2131 = vmatmul.mubr.bf16.gmra.mxu1 %v4111_v44 }
 0x101   : > { %v2511_v61 = vadd.f32 %v2510_v52, %v2509_v30  ;;  %v3874_v50 = vadd.f32 %v2620_v18, %v2508_v29  ;;  %2138 = vmatprep.mubr.bf16.mxu1 %v4112_v9 }
 0x102   : > { %v2512_v14 = vpop.f32.mrf.mxu0  ;;  %v2622_v15 = vpop.f32.mrf.mxu1 }
 0x103   : > { %v2623_v48 = vadd.f32 %v2622_v15, %v2621_v42  ;;  %v332_v42 = vld [vmem:[%s3819_s26 + $0x10] sm:$0x11] }
 0x104   : > { %v2513_v20 = vpop.f32.mrf.mxu0  ;;  %v2624_v58 = vpop.f32.mrf.mxu1 }
 0x105   : > { %v2514_v47 = vadd.f32 %v2513_v20, %v2512_v14  ;;  %v3879_v19 = vadd.f32 %v2623_v48, %v2511_v61 }
 0x106   : > { %v2515_v12 = vpop.f32.mrf.mxu0  ;;  %1978 = vmatmul.mubr.bf16.gmra.mxu0 %v4113_v13  ;;  %v2625_v31 = vpop.f32.mrf.mxu1  ;;  %v2414_v13 = vcombine.high %v332_v42, %v332_v42 }
 0x107   : > { %1985 = vmatprep.mubr.bf16.mxu0 %v4114_v41  ;;  %v2626_v57 = vadd.f32 %v2625_v31, %v2624_v58  ;;  %v1018_v31 = vshrl.u32 %v3141_v16, 16 }
 0x108   : > { %v2516_v49 = vpop.f32.mrf.mxu0  ;;  %v2627_v5 = vpop.f32.mrf.mxu1  ;;  %2139 = vmatmul.mubr.bf16.gmra.mxu1 %v4115_v8 }
 0x109   : > { %v2517_v17 = vadd.f32 %v2516_v49, %v2515_v12  ;;  %v3882_v21 = vadd.f32 %v2626_v57, %v2514_v47  ;;  %2146 = vmatprep.mubr.bf16.mxu1 %v4116_v40  ;;  %v1020_v12 = vshll.u32 %v3141_v16, 16  ;;  %v2413_v40 = vcombine.low %v332_v42, %v332_v42 }
 0x10a   : > { %v2518_v22 = vpop.f32.mrf.mxu0  ;;  %v2628_v27 = vpop.f32.mrf.mxu1 }
 0x10b   : > { %v2629_v51 = vadd.f32 %v2628_v27, %v2627_v5  ;;  %v1022_v57 = vrot.slane %v1020_v12, 1 }
 0x10c   : > { %v2519_v3 = vpop.f32.mrf.mxu0  ;;  %v2630_v63 = vpop.f32.mrf.mxu1 }
 0x10d   : > { %v2520_v38 = vadd.f32 %v2519_v3, %v2518_v22  ;;  %v3887_v4 = vadd.f32 %v2629_v51, %v2517_v17  ;;  %v3139_v17 = vld [vmem:[%s3819_s26] ss:$8 sps:$4 sm:$0xff]   ;;  %v1023_v27 = vor.u32 %v1022_v57, %v1018_v31 }
 0x10e   : > { %v2521_v43 = vpop.f32.mrf.mxu0  ;;  %1986 = vmatmul.mubr.bf16.gmra.mxu0 %v4117_v45  ;;  %v2631_v10 = vpop.f32.mrf.mxu1 }
 0x10f   : > { %1993 = vmatprep.mubr.bf16.mxu0 %v4118_v60  ;;  %v2632_v23 = vadd.f32 %v2631_v10, %v2630_v63  ;;  %v1006_v10 = vshrl.u32 %v3139_v17, 16 }
 0x110   : > { %v2522_v54 = vpop.f32.mrf.mxu0  ;;  %v2633_v53 = vpop.f32.mrf.mxu1  ;;  %2147 = vmatmul.mubr.bf16.gmra.mxu1 %v4119_v55 }
 0x111   : > { %v2523_v0 = vadd.f32 %v2522_v54, %v2521_v43  ;;  %v3890_v6 = vadd.f32 %v2632_v23, %v2520_v38  ;;  %2154 = vmatprep.mubr.bf16.mxu1 %v4120_v25  ;;  %v1008_v43 = vshll.u32 %v3139_v17, 16 }
 0x112   : > { %v2524_v7 = vpop.f32.mrf.mxu0  ;;  %v2634_v29 = vpop.f32.mrf.mxu1 }
 0x113   : > { %v2635_v30 = vadd.f32 %v2634_v29, %v2633_v53  ;;  %v1010_v23 = vrot.slane %v1008_v43, 1 }
 0x114   : > { %v2525_v46 = vpop.f32.mrf.mxu0  ;;  %v2636_v36 = vpop.f32.mrf.mxu1 }
 0x115   : > { %v2526_v59 = vadd.f32 %v2525_v46, %v2524_v7  ;;  %v3895_v56 = vadd.f32 %v2635_v30, %v2523_v0  ;;  %v1013_v46 = vshll.u32 %v2413_v40, 16  ;;  %v1011_v30 = vor.u32 %v1010_v23, %v1006_v10 }
 0x116   : > { %v2527_v28 = vpop.f32.mrf.mxu0  ;;  %1994 = vmatmul.mubr.bf16.gmra.mxu0 %v3757_v33  ;;  %v2637_v14 = vpop.f32.mrf.mxu1 }
 0x117   : > { %2001 = vmatprep.mubr.bf16.mxu0 %v3764_v39  ;;  %v2638_v18 = vadd.f32 %v2637_v14, %v2636_v36 }
 0x118   : > { %v2528_v32 = vpop.f32.mrf.mxu0  ;;  %v2639_v44 = vpop.f32.mrf.mxu1  ;;  %2155 = vmatmul.mubr.bf16.gmra.mxu1 %v3795_v11 }
 0x119   : > { %v2529_v52 = vadd.f32 %v2528_v32, %v2527_v28  ;;  %v3900_v47 = vadd.f32 %v2638_v18, %v2526_v59  ;;  %2162 = vmatprep.mubr.bf16.mxu1 %v3802_v62  ;;  %v1025_v62 = vshll.u32 %v2414_v13, 16  ;;  %v1015_v32 = vrot.slane %v1013_v46, 1 }
 0x11a   : > { %v2530_v61 = vpop.f32.mrf.mxu0  ;;  %v2640_v9 = vpop.f32.mrf.mxu1 }
 0x11b   : > { %v2641_v15 = vadd.f32 %v2640_v9, %v2639_v44  ;;  %v1027_v60 = vrot.slane %v1025_v62, 1 }
 0x11c   : > { %v2531_v20 = vpop.f32.mrf.mxu0  ;;  %v2642_v48 = vpop.f32.mrf.mxu1 }
 0x11d   : > { %v2532_v33 = vadd.f32 %v2531_v20, %v2530_v61  ;;  %v3905_v58 = vadd.f32 %v2641_v15, %v2529_v52  ;;  %v1028_v53 = vsel %vm573_vm0, %v1023_v27, %v1027_v60  ;;  %v1016_v20 = vsel %vm573_vm0, %v1011_v30, %v1015_v32 }
 0x11e   : > { %v2533_v39 = vpop.f32.mrf.mxu0  ;;  %2002 = vmatmul.mubr.bf16.gmra.mxu0 %v3778_v24  ;;  %v2643_v22 = vpop.f32.mrf.mxu1 }
 0x11f   : > { %2009 = vmatprep.mubr.bf16.mxu0 %v3785_v34  ;;  %v2644_v3 = vadd.f32 %v2643_v22, %v2642_v48 }
 0x120   : > { %v2534_v41 = vpop.f32.mrf.mxu0  ;;  %v2645_v24 = vpop.f32.mrf.mxu1  ;;  %2163 = vmatmul.mubr.bf16.gmra.mxu1 %v3813_v2 }
 0x121   : > { %v2535_v49 = vadd.f32 %v2534_v41, %v2533_v39  ;;  %v3909_v8 = vadd.f32 %v2644_v3, %v2532_v33  ;;  %2170 = vmatprep.mubr.bf16.mxu1 %v3822_v26 }
 0x122   : > { %v2536_v11 = vpop.f32.mrf.mxu0  ;;  %v2646_v45 = vpop.f32.mrf.mxu1 }
 0x123   : > { %v2647_v51 = vadd.f32 %v2646_v45, %v2645_v24 }
 0x124   : > { %v2537_v5 = vpop.f32.mrf.mxu0  ;;  %v2648_v63 = vpop.f32.mrf.mxu1 }
 0x125   : > { %v2538_v34 = vadd.f32 %v2537_v5, %v2536_v11  ;;  %v3913_v7 = vadd.f32 %v2647_v51, %v2535_v49 }
 0x126   : > { %v2539_v38 = vpop.f32.mrf.mxu0  ;;  %2010 = vmatmul.mubr.bf16.gmra.mxu0 %v3799_v35  ;;  %v2649_v26 = vpop.f32.mrf.mxu1 }
 0x127   : > { %2017 = vmatprep.mubr.bf16.mxu0 %v3141_v16  ;;  %v2650_v35 = vadd.f32 %v2649_v26, %v2648_v63 }
 0x128   : > { %v2540_v54 = vpop.f32.mrf.mxu0  ;;  %v2651_v59 = vpop.f32.mrf.mxu1  ;;  %2171 = vmatmul.mubr.bf16.gmra.mxu1 %v3829_v37 }
 0x129   : > { %v2541_v0 = vadd.f32 %v2540_v54, %v2539_v38  ;;  %v3917_v28 = vadd.f32 %v2650_v35, %v2538_v34  ;;  %2178 = vmatprep.mubr.bf16.mxu1 %v1028_v53 }
 0x12a   : > { %v2542_v2 = vpop.f32.mrf.mxu0  ;;  %v2652_v36 = vpop.f32.mrf.mxu1 }
 0x12b   : > { %v2653_v52 = vadd.f32 %v2652_v36, %v2651_v59 }
 0x12c   : > { %v2543_v55 = vpop.f32.mrf.mxu0  ;;  %v2654_v14 = vpop.f32.mrf.mxu1 }
 0x12d   : > { %v2544_v25 = vadd.f32 %v2543_v55, %v2542_v2  ;;  %v3919_v18 = vadd.f32 %v2653_v52, %v2541_v0 }
 0x12e   : > { %v2545_v29 = vpop.f32.mrf.mxu0  ;;  %2018 = vmatmul.mubr.bf16.gmra.mxu0 %v3139_v17  ;;  %v2655_v44 = vpop.f32.mrf.mxu1 }
 0x12f   : > { %v2656_v37 = vadd.f32 %v2655_v44, %v2654_v14 }
 0x130   : > { %v2546_v61 = vpop.f32.mrf.mxu0  ;;  %v2657_v39 = vpop.f32.mrf.mxu1  ;;  %2179 = vmatmul.mubr.bf16.gmra.mxu1 %v1016_v20 }
 0x131   : > { %v2547_v16 = vadd.f32 %v2546_v61, %v2545_v29  ;;  %v3922_v12 = vadd.f32 %v2656_v37, %v2544_v25 }
 0x132   : > { %v2548_v42 = vpop.f32.mrf.mxu0  ;;  %v2658_v15 = vpop.f32.mrf.mxu1 }
 0x133   : > { %v2659_v41 = vadd.f32 %v2658_v15, %v2657_v39 }
 0x134   : > { %v2549_v33 = vpop.f32.mrf.mxu0  ;;  %v2660_v49 = vpop.f32.mrf.mxu1 }
 0x135   : > { %v2550_v9 = vadd.f32 %v2549_v33, %v2548_v42  ;;  %v3924_v17 = vadd.f32 %v2659_v41, %v2547_v16 }
 0x136   : > { %v2551_v13 = vpop.f32.mrf.mxu0  ;;  %v2661_v31 = vpop.f32.mrf.mxu1 }
 0x137   : > { %v2662_v57 = vadd.f32 %v2661_v31, %v2660_v49 }
 0x138   : > { %v2552_v48 = vpop.f32.mrf.mxu0  ;;  %v2663_v3 = vpop.f32.mrf.mxu1 }
 0x139   : > { %v2553_v11 = vadd.f32 %v2552_v48, %v2551_v13  ;;  %v3926_v24 = vadd.f32 %v2662_v57, %v2550_v9 }
 0x13a   : > { %v2554_v22 = vpop.f32.mrf.mxu0  ;;  %v2664_v38 = vpop.f32.mrf.mxu1 }
 0x13b   : > { %v2665_v40 = vadd.f32 %v2664_v38, %v2663_v3 }
 0x13c   : > { %v2555_v62 = vpop.f32.mrf.mxu0  ;;  %v2666_v45 = vpop.f32.mrf.mxu1 }
 0x13d   : > { %v2556_v5 = vadd.f32 %v2555_v62, %v2554_v22  ;;  %v3928_v60 = vadd.f32 %v2665_v40, %v2553_v11 }
 0x13e   : > { %v2557_v34 = vpop.f32.mrf.mxu0  ;;  %v2667_v54 = vpop.f32.mrf.mxu1 }
 0x13f   : > { %v2668_v63 = vadd.f32 %v2667_v54, %v2666_v45 }
 0x140   : > { %v2558_v43 = vpop.f32.mrf.mxu0  ;;  %v2669_v2 = vpop.f32.mrf.mxu1 }
 0x141   : > { %v2559_v27 = vadd.f32 %v2558_v43, %v2557_v34  ;;  %v3930_v23 = vadd.f32 %v2668_v63, %v2556_v5 }
 0x142   : > { %v2560_v51 = vpop.f32.mrf.mxu0  ;;  %v2670_v26 = vpop.f32.mrf.mxu1 }
 0x143   : > { %v2671_v53 = vadd.f32 %v2670_v26, %v2669_v2 }
 0x144   : > { %v2561_v0 = vpop.f32.mrf.mxu0  ;;  %v2672_v55 = vpop.f32.mrf.mxu1 }
 0x145   : > { %v2562_v10 = vadd.f32 %v2561_v0, %v2560_v51  ;;  %v3932_v25 = vadd.f32 %v2671_v53, %v2559_v27 }
 0x146   : > { %v2563_v46 = vpop.f32.mrf.mxu0  ;;  %v2673_v30 = vpop.f32.mrf.mxu1 }
 0x147   : > { %v2674_v32 = vadd.f32 %v2673_v30, %v2672_v55 }
 0x148   : > { %v2564_v35 = vpop.f32.mrf.mxu0  ;;  %v2675_v52 = vpop.f32.mrf.mxu1 }
 0x149   : > { %v2565_v59 = vadd.f32 %v2564_v35, %v2563_v46  ;;  %v3934_v14 = vadd.f32 %v2674_v32, %v2562_v10 }
 0x14a   : > { %v2566_v29 = vpop.f32.mrf.mxu0  ;;  %v2676_v20 = vpop.f32.mrf.mxu1 }
 0x14b   : > { %v2677_v42 = vadd.f32 %v2676_v20, %v2675_v52 }
 0x14c   : > { %v2567_v36 = vpop.f32.mrf.mxu0  ;;  %v2678_v37 = vpop.f32.mrf.mxu1 }
 0x14d   : > { %v2568_v61 = vadd.f32 %v2567_v36, %v2566_v29  ;;  %v3936_v39 = vadd.f32 %v2677_v42, %v2565_v59 }
 0x14e   : > { %v2569_v16 = vpop.f32.mrf.mxu0  ;;  %v2679_v13 = vpop.f32.mrf.mxu1 }
 0x14f   : > { %v2680_v15 = vadd.f32 %v2679_v13, %v2678_v37 }
 0x150   : > { %v2570_v44 = vpop.f32.mrf.mxu0  ;;  %v2681_v48 = vpop.f32.mrf.mxu1 }
 0x151   : > { %v2571_v33 = vadd.f32 %v2570_v44, %v2569_v16  ;;  %v3938_v11 = vadd.f32 %v2680_v15, %v2568_v61 }
 0x152   : > { %v2572_v9 = vpop.f32.mrf.mxu0  ;;  %v2682_v31 = vpop.f32.mrf.mxu1 }
 0x153   : > { %v2683_v57 = vadd.f32 %v2682_v31, %v2681_v48 }
 0x154   : > { %v2573_v41 = vpop.f32.mrf.mxu0  ;;  %v2684_v3 = vpop.f32.mrf.mxu1 }
 0x155   : > { %v2574_v49 = vadd.f32 %v2573_v41, %v2572_v9  ;;  %v3940_v34 = vadd.f32 %v2683_v57, %v2571_v33 }
 0x156   : > { %v2575_v22 = vpop.f32.mrf.mxu0  ;;  %v2685_v40 = vpop.f32.mrf.mxu1 }
 0x157   : > { %v2686_v43 = vadd.f32 %v2685_v40, %v2684_v3 }
 0x158   : > { %v2576_v62 = vpop.f32.mrf.mxu0  ;;  %v2687_v27 = vpop.f32.mrf.mxu1 }
 0x159   : > { %v2577_v5 = vadd.f32 %v2576_v62, %v2575_v22  ;;  %v3942_v54 = vadd.f32 %v2686_v43, %v2574_v49 }
 0x15a   : > { %v2578_v38 = vpop.f32.mrf.mxu0  ;;  %v2688_v0 = vpop.f32.mrf.mxu1 }
 0x15b   : > { %v2689_v2 = vadd.f32 %v2688_v0, %v2687_v27 }
 0x15c   : > { %v2579_v45 = vpop.f32.mrf.mxu0  ;;  %v2690_v46 = vpop.f32.mrf.mxu1 }
 0x15d   : > { %v2580_v51 = vadd.f32 %v2579_v45, %v2578_v38  ;;  %v3944_v53 = vadd.f32 %v2689_v2, %v2577_v5 }
 0x15e   : > { %v2581_v63 = vpop.f32.mrf.mxu0  ;;  %v2691_v55 = vpop.f32.mrf.mxu1 }
 0x15f   : > { %v2692_v59 = vadd.f32 %v2691_v55, %v2690_v46 }
 0x160   : > { %v2582_v10 = vpop.f32.mrf.mxu0  ;;  %v2693_v30 = vpop.f32.mrf.mxu1 }
 0x161   : > { %v2583_v26 = vadd.f32 %v2582_v10, %v2581_v63  ;;  %v3946_v36 = vadd.f32 %v2692_v59, %v2580_v51 }
 0x162   : > { %v2584_v35 = vpop.f32.mrf.mxu0  ;;  %v2694_v61 = vpop.f32.mrf.mxu1 }
 0x163   : > { %v2695_v16 = vadd.f32 %v2694_v61, %v2693_v30 }
 0x164   : > { %v2585_v29 = vpop.f32.mrf.mxu0  ;;  %v2696_v42 = vpop.f32.mrf.mxu1 }
 0x165   : > { %v2586_v32 = vadd.f32 %v2585_v29, %v2584_v35  ;;  %v3948_v37 = vadd.f32 %v2695_v16, %v2583_v26 }
 0x166   : > { %v2587_v52 = vpop.f32.mrf.mxu0  ;;  %v2697_v9 = vpop.f32.mrf.mxu1 }
 0x167   : > { %v2698_v13 = vadd.f32 %v2697_v9, %v2696_v42 }
 0x168   : > { %v2588_v20 = vpop.f32.mrf.mxu0  ;;  %v2699_v41 = vpop.f32.mrf.mxu1 }
 0x169   : > { %v2589_v44 = vadd.f32 %v2588_v20, %v2587_v52  ;;  %v3950_v49 = vadd.f32 %v2698_v13, %v2586_v32 }
 0x16a   : > { %v2590_v33 = vpop.f32.mrf.mxu0  ;;  %v2700_v31 = vpop.f32.mrf.mxu1 }
 0x16b   : > { %v2701_v57 = vadd.f32 %v2700_v31, %v2699_v41 }
 0x16c   : > { %v2591_v15 = vpop.f32.mrf.mxu0  ;;  %v2702_v3 = vpop.f32.mrf.mxu1 }
 0x16d   : > { %v2592_v48 = vadd.f32 %v2591_v15, %v2590_v33  ;;  %v3952_v38 = vadd.f32 %v2701_v57, %v2589_v44 }
 0x16e   : > { %v2593_v22 = vpop.f32.mrf.mxu0  ;;  %v2703_v43 = vpop.f32.mrf.mxu1 }
 0x16f   : > { %v2704_v45 = vadd.f32 %v2703_v43, %v2702_v3 }
 0x170   : > { %v2594_v62 = vpop.f32.mrf.mxu0  ;;  %v2705_v51 = vpop.f32.mrf.mxu1 }
 0x171   : > { %v2595_v5 = vadd.f32 %v2594_v62, %v2593_v22  ;;  %v3954_v0 = vadd.f32 %v2704_v45, %v2592_v48 }
 0x172   : > { %v2596_v40 = vpop.f32.mrf.mxu0  ;;  %v2706_v10 = vpop.f32.mrf.mxu1 }
 0x173   : > { %v2707_v46 = vadd.f32 %v2706_v10, %v2705_v51 }
 0x174   : > { %v2597_v27 = vpop.f32.mrf.mxu0  ;;  %v2708_v35 = vpop.f32.mrf.mxu1 }
 0x175   : > { %v2598_v63 = vadd.f32 %v2597_v27, %v2596_v40  ;;  %v3956_v55 = vadd.f32 %v2707_v46, %v2595_v5 }
 0x176   : > { %v2727_v2 = vpop.f32.mrf.mxu0  ;;  %v2709_v30 = vpop.f32.mrf.mxu1 }
 0x177   : > { %v2710_v32 = vadd.f32 %v2709_v30, %v2708_v35 }
 0x178   : > { %v2728_v26 = vpop.f32.mrf.mxu0  ;;  %v2839_v61 = vpop.f32.mrf.mxu1 }
 0x179   : > { %v2729_v59 = vadd.f32 %v2728_v26, %v2727_v2  ;;  %v3959_v16 = vadd.f32 %v2710_v32, %v2598_v63 }
 0x17a   : > { %v2730_v29 = vpop.f32.mrf.mxu0  ;;  %v2840_v33 = vpop.f32.mrf.mxu1 }
 0x17b   : > { %v1900_v20 = vadd.f32 %v2729_v59, %v3871_v1  ;;  %v2841_v9 = vadd.f32 %v2840_v33, %v2839_v61 }
 0x17c   : > { %v2731_v52 = vpop.f32.mrf.mxu0  ;;  %v2842_v15 = vpop.f32.mrf.mxu1 }
 0x17d   : > { %v2732_v42 = vadd.f32 %v2731_v52, %v2730_v29  ;;  %v2061_v41 = vadd.f32 %v2841_v9, %v1900_v20 }
 0x17e   : > { %v2733_v44 = vpop.f32.mrf.mxu0  ;;  %v2843_v57 = vpop.f32.mrf.mxu1 }
 0x17f   : > { %v1903_v48 = vadd.f32 %v2732_v42, %v3874_v50  ;;  %2187 = vst [vmem:[%s3965_s27] sm:$0xff] %v2061_v41  ;;  %v2844_v1 = vadd.f32 %v2843_v57, %v2842_v15 }
 0x180   : > { %v2734_v13 = vpop.f32.mrf.mxu0  ;;  %v2845_v3 = vpop.f32.mrf.mxu1 }
 0x181   : > { %v2735_v22 = vadd.f32 %v2734_v13, %v2733_v44  ;;  %v2064_v5 = vadd.f32 %v2844_v1, %v1903_v48 }
 0x182   : > { %v2736_v31 = vpop.f32.mrf.mxu0  ;;  %v2846_v27 = vpop.f32.mrf.mxu1 }
 0x183   : > { %v1908_v40 = vadd.f32 %v2735_v22, %v3879_v19  ;;  %2188 = vst [vmem:[%s3965_s27 + $0x8] sm:$0xff] %v2064_v5  ;;  %v2847_v50 = vadd.f32 %v2846_v27, %v2845_v3 }
 0x184   : > { %v2737_v62 = vpop.f32.mrf.mxu0  ;;  %v2848_v63 = vpop.f32.mrf.mxu1 }
 0x185   : > { %v2738_v43 = vadd.f32 %v2737_v62, %v2736_v31  ;;  %v2069_v2 = vadd.f32 %v2847_v50, %v1908_v40 }
 0x186   : > { %v2739_v45 = vpop.f32.mrf.mxu0  ;;  %v2849_v35 = vpop.f32.mrf.mxu1 }
 0x187   : > { %v1911_v10 = vadd.f32 %v2738_v43, %v3882_v21  ;;  %2189 = vst [vmem:[%s3965_s27 + $0x10] sm:$0xff] %v2069_v2  ;;  %v2850_v59 = vadd.f32 %v2849_v35, %v2848_v63 }
 0x188   : > { %v2740_v51 = vpop.f32.mrf.mxu0  ;;  %v2851_v30 = vpop.f32.mrf.mxu1 }
 0x189   : > { %v2741_v46 = vadd.f32 %v2740_v51, %v2739_v45  ;;  %v2072_v19 = vadd.f32 %v2850_v59, %v1911_v10 }
 0x18a   : > { %v2742_v26 = vpop.f32.mrf.mxu0  ;;  %v2852_v20 = vpop.f32.mrf.mxu1 }
 0x18b   : > { %v1916_v32 = vadd.f32 %v2741_v46, %v3887_v4  ;;  %2190 = vst [vmem:[%s3965_s27 + $0x18] sm:$0xff] %v2072_v19  ;;  %v2853_v42 = vadd.f32 %v2852_v20, %v2851_v30 }
 0x18c   : > { %v2743_v29 = vpop.f32.mrf.mxu0  ;;  %v2854_v33 = vpop.f32.mrf.mxu1 }
 0x18d   : > { %v2744_v52 = vadd.f32 %v2743_v29, %v2742_v26  ;;  %v2077_v21 = vadd.f32 %v2853_v42, %v1916_v32 }
 0x18e   : > { %v2745_v61 = vpop.f32.mrf.mxu0  ;;  %v2855_v41 = vpop.f32.mrf.mxu1 }
 0x18f   : > { %v1919_v9 = vadd.f32 %v2744_v52, %v3890_v6  ;;  %2191 = vst [vmem:[%s3965_s27 + $0x20] sm:$0xff] %v2077_v21  ;;  %v2856_v48 = vadd.f32 %v2855_v41, %v2854_v33 }
 0x190   : > { %v2746_v44 = vpop.f32.mrf.mxu0  ;;  %v2857_v31 = vpop.f32.mrf.mxu1 }
 0x191   : > { %v2747_v13 = vadd.f32 %v2746_v44, %v2745_v61  ;;  %v2080_v4 = vadd.f32 %v2856_v48, %v1919_v9 }
 0x192   : > { %v2748_v15 = vpop.f32.mrf.mxu0  ;;  %v2858_v3 = vpop.f32.mrf.mxu1 }
 0x193   : > { %v1924_v57 = vadd.f32 %v2747_v13, %v3895_v56  ;;  %2192 = vst [vmem:[%s3965_s27 + $0x28] sm:$0xff] %v2080_v4  ;;  %v2859_v5 = vadd.f32 %v2858_v3, %v2857_v31 }
 0x194   : > { %v2749_v22 = vpop.f32.mrf.mxu0  ;;  %v2860_v43 = vpop.f32.mrf.mxu1 }
 0x195   : > { %v2750_v1 = vadd.f32 %v2749_v22, %v2748_v15  ;;  %v2085_v6 = vadd.f32 %v2859_v5, %v1924_v57 }
 0x196   : > { %v2751_v62 = vpop.f32.mrf.mxu0  ;;  %v2861_v51 = vpop.f32.mrf.mxu1 }
 0x197   : > { %v1927_v45 = vadd.f32 %v2750_v1, %v3900_v47  ;;  %2193 = vst [vmem:[%s3965_s27 + $0x30] sm:$0xff] %v2085_v6  ;;  %v2862_v63 = vadd.f32 %v2861_v51, %v2860_v43 }
 0x198   : > { %v2752_v40 = vpop.f32.mrf.mxu0  ;;  %v2863_v10 = vpop.f32.mrf.mxu1 }
 0x199   : > { %v2753_v27 = vadd.f32 %v2752_v40, %v2751_v62  ;;  %v2088_v56 = vadd.f32 %v2862_v63, %v1927_v45 }
 0x19a   : > { %v2754_v50 = vpop.f32.mrf.mxu0  ;;  %v2864_v59 = vpop.f32.mrf.mxu1 }
 0x19b   : > { %v1932_v46 = vadd.f32 %v2753_v27, %v3905_v58  ;;  %2194 = vst [vmem:[%s3965_s27 + $0x38] sm:$0xff] %v2088_v56  ;;  %v2865_v29 = vadd.f32 %v2864_v59, %v2863_v10 }
 0x19c   : > { %v2755_v2 = vpop.f32.mrf.mxu0  ;;  %v2866_v19 = vpop.f32.mrf.mxu1 }
 0x19d   : > { %v2756_v26 = vadd.f32 %v2755_v2, %v2754_v50  ;;  %v2093_v47 = vadd.f32 %v2865_v29, %v1932_v46 }
 0x19e   : > { %v2757_v35 = vpop.f32.mrf.mxu0  ;;  %v2867_v20 = vpop.f32.mrf.mxu1 }
 0x19f   : > { %v1935_v32 = vadd.f32 %v2756_v26, %v3909_v8  ;;  %2195 = vst [vmem:[%s3965_s27 + $0x40] sm:$0xff] %v2093_v47  ;;  %v2868_v42 = vadd.f32 %v2867_v20, %v2866_v19 }
 0x1a0   : > { %v2758_v30 = vpop.f32.mrf.mxu0  ;;  %v2869_v33 = vpop.f32.mrf.mxu1 }
 0x1a1   : > { %v2759_v52 = vadd.f32 %v2758_v30, %v2757_v35  ;;  %v2096_v58 = vadd.f32 %v2868_v42, %v1935_v32 }
 0x1a2   : > { %v2760_v61 = vpop.f32.mrf.mxu0  ;;  %v2870_v15 = vpop.f32.mrf.mxu1 }
 0x1a3   : > { %v1940_v21 = vadd.f32 %v2759_v52, %v3913_v7  ;;  %2196 = vst [vmem:[%s3965_s27 + $0x48] sm:$0xff] %v2096_v58  ;;  %v2871_v41 = vadd.f32 %v2870_v15, %v2869_v33 }
 0x1a4   : > { %v2761_v44 = vpop.f32.mrf.mxu0  ;;  %v2872_v22 = vpop.f32.mrf.mxu1 }
 0x1a5   : > { %v2762_v9 = vadd.f32 %v2761_v44, %v2760_v61  ;;  %v2101_v8 = vadd.f32 %v2871_v41, %v1940_v21 }
 0x1a6   : > { %v2763_v13 = vpop.f32.mrf.mxu0  ;;  %v2873_v1 = vpop.f32.mrf.mxu1 }
 0x1a7   : > { %v1943_v31 = vadd.f32 %v2762_v9, %v3917_v28  ;;  %2197 = vst [vmem:[%s3965_s27 + $0x50] sm:$0xff] %v2101_v8  ;;  %v2874_v62 = vadd.f32 %v2873_v1, %v2872_v22 }
 0x1a8   : > { %v2764_v48 = vpop.f32.mrf.mxu0  ;;  %v2875_v5 = vpop.f32.mrf.mxu1 }
 0x1a9   : > { %v2765_v4 = vadd.f32 %v2764_v48, %v2763_v13  ;;  %v2104_v7 = vadd.f32 %v2874_v62, %v1943_v31 }
 0x1aa   : > { %v2766_v57 = vpop.f32.mrf.mxu0  ;;  %v2876_v45 = vpop.f32.mrf.mxu1 }
 0x1ab   : > { %v1948_v40 = vadd.f32 %v2765_v4, %v3919_v18  ;;  %2198 = vst [vmem:[%s3965_s27 + $0x58] sm:$0xff] %v2104_v7  ;;  %v2877_v27 = vadd.f32 %v2876_v45, %v2875_v5 }
 0x1ac   : > { %v2767_v3 = vpop.f32.mrf.mxu0  ;;  %v2878_v51 = vpop.f32.mrf.mxu1 }
 0x1ad   : > { %v2768_v43 = vadd.f32 %v2767_v3, %v2766_v57  ;;  %v2109_v28 = vadd.f32 %v2877_v27, %v1948_v40 }
 0x1ae   : > { %v2769_v6 = vpop.f32.mrf.mxu0  ;;  %v2879_v56 = vpop.f32.mrf.mxu1 }
 0x1af   : > { %v1951_v63 = vadd.f32 %v2768_v43, %v3922_v12  ;;  %2199 = vst [vmem:[%s3965_s27 + $0x60] sm:$0xff] %v2109_v28  ;;  %v2880_v46 = vadd.f32 %v2879_v56, %v2878_v51 }
 0x1b0   : > { %v2770_v50 = vpop.f32.mrf.mxu0  ;;  %v2881_v35 = vpop.f32.mrf.mxu1 }
 0x1b1   : > { %v2771_v2 = vadd.f32 %v2770_v50, %v2769_v6  ;;  %v2112_v18 = vadd.f32 %v2880_v46, %v1951_v63 }
 0x1b2   : > { %v2772_v10 = vpop.f32.mrf.mxu0  ;;  %v2882_v19 = vpop.f32.mrf.mxu1 }
 0x1b3   : > { %v1956_v59 = vadd.f32 %v2771_v2, %v3924_v17  ;;  %2200 = vst [vmem:[%s3965_s27 + $0x68] sm:$0xff] %v2112_v18  ;;  %v2883_v47 = vadd.f32 %v2882_v19, %v2881_v35 }
 0x1b4   : > { %v2773_v26 = vpop.f32.mrf.mxu0  ;;  %v2884_v52 = vpop.f32.mrf.mxu1 }
 0x1b5   : > { %v2774_v29 = vadd.f32 %v2773_v26, %v2772_v10  ;;  %v2117_v12 = vadd.f32 %v2883_v47, %v1956_v59 }
 0x1b6   : > { %v2775_v30 = vpop.f32.mrf.mxu0  ;;  %v2885_v44 = vpop.f32.mrf.mxu1 }
 0x1b7   : > { %v1959_v61 = vadd.f32 %v2774_v29, %v3926_v24  ;;  %2201 = vst [vmem:[%s3965_s27 + $0x70] sm:$0xff] %v2117_v12  ;;  %v2886_v33 = vadd.f32 %v2885_v44, %v2884_v52 }
 0x1b8   : > { %v2776_v32 = vpop.f32.mrf.mxu0  ;;  %v2887_v21 = vpop.f32.mrf.mxu1 }
 0x1b9   : > { %v2777_v20 = vadd.f32 %v2776_v32, %v2775_v30  ;;  %v2120_v17 = vadd.f32 %v2886_v33, %v1959_v61 }
 0x1ba   : > { %v2778_v42 = vpop.f32.mrf.mxu0  ;;  %v2888_v41 = vpop.f32.mrf.mxu1 }
 0x1bb   : > { %v1964_v9 = vadd.f32 %v2777_v20, %v3928_v60  ;;  %2202 = vst [vmem:[%s3965_s27 + $0x78] sm:$0xff] %v2120_v17  ;;  %v2889_v48 = vadd.f32 %v2888_v41, %v2887_v21 }
 0x1bc   : > { %v2779_v58 = vpop.f32.mrf.mxu0  ;;  %v2890_v8 = vpop.f32.mrf.mxu1 }
 0x1bd   : > { %v2780_v13 = vadd.f32 %v2779_v58, %v2778_v42  ;;  %v2125_v24 = vadd.f32 %v2889_v48, %v1964_v9 }
 0x1be   : > { %v2781_v15 = vpop.f32.mrf.mxu0  ;;  %v2891_v1 = vpop.f32.mrf.mxu1 }
 0x1bf   : > { %v1967_v31 = vadd.f32 %v2780_v13, %v3930_v23  ;;  %2203 = vst [vmem:[%s3965_s27 + $0x80] sm:$0xff] %v2125_v24  ;;  %v2892_v62 = vadd.f32 %v2891_v1, %v2890_v8 }
 0x1c0   : > { %v2782_v22 = vpop.f32.mrf.mxu0  ;;  %v2893_v5 = vpop.f32.mrf.mxu1 }
 0x1c1   : > { %v2783_v4 = vadd.f32 %v2782_v22, %v2781_v15  ;;  %v2128_v60 = vadd.f32 %v2892_v62, %v1967_v31 }
 0x1c2   : > { %v2784_v57 = vpop.f32.mrf.mxu0  ;;  %v2894_v6 = vpop.f32.mrf.mxu1 }
 0x1c3   : > { %v1972_v7 = vadd.f32 %v2783_v4, %v3932_v25  ;;  %2204 = vst [vmem:[%s3965_s27 + $0x88] sm:$0xff] %v2128_v60  ;;  %v2895_v45 = vadd.f32 %v2894_v6, %v2893_v5 }
 0x1c4   : > { %v2785_v3 = vpop.f32.mrf.mxu0  ;;  %v2896_v50 = vpop.f32.mrf.mxu1 }
 0x1c5   : > { %v2786_v40 = vadd.f32 %v2785_v3, %v2784_v57  ;;  %v2133_v23 = vadd.f32 %v2895_v45, %v1972_v7 }
 0x1c6   : > { %v2787_v43 = vpop.f32.mrf.mxu0  ;;  %v2897_v2 = vpop.f32.mrf.mxu1 }
 0x1c7   : > { %v1975_v51 = vadd.f32 %v2786_v40, %v3934_v14  ;;  %2205 = vst [vmem:[%s3965_s27 + $0x90] sm:$0xff] %v2133_v23  ;;  %v2898_v10 = vadd.f32 %v2897_v2, %v2896_v50 }
 0x1c8   : > { %v2788_v27 = vpop.f32.mrf.mxu0  ;;  %v2899_v46 = vpop.f32.mrf.mxu1 }
 0x1c9   : > { %v2789_v28 = vadd.f32 %v2788_v27, %v2787_v43  ;;  %v2136_v25 = vadd.f32 %v2898_v10, %v1975_v51 }
 0x1ca   : > { %v2790_v63 = vpop.f32.mrf.mxu0  ;;  %v2900_v59 = vpop.f32.mrf.mxu1 }
 0x1cb   : > { %v1980_v26 = vadd.f32 %v2789_v28, %v3936_v39  ;;  %2206 = vst [vmem:[%s3965_s27 + $0x98] sm:$0xff] %v2136_v25  ;;  %v2901_v29 = vadd.f32 %v2900_v59, %v2899_v46 }
 0x1cc   : > { %v2791_v56 = vpop.f32.mrf.mxu0  ;;  %v2902_v19 = vpop.f32.mrf.mxu1 }
 0x1cd   : > { %v2792_v35 = vadd.f32 %v2791_v56, %v2790_v63  ;;  %v2141_v14 = vadd.f32 %v2901_v29, %v1980_v26 }
 0x1ce   : > { %v2793_v18 = vpop.f32.mrf.mxu0  ;;  %v2903_v12 = vpop.f32.mrf.mxu1 }
 0x1cf   : > { %v1983_v47 = vadd.f32 %v2792_v35, %v3938_v11  ;;  %2207 = vst [vmem:[%s3965_s27 + $0xa0] sm:$0xff] %v2141_v14  ;;  %v2904_v61 = vadd.f32 %v2903_v12, %v2902_v19 }
 0x1d0   : > { %v2794_v30 = vpop.f32.mrf.mxu0  ;;  %v2905_v42 = vpop.f32.mrf.mxu1 }
 0x1d1   : > { %v2795_v32 = vadd.f32 %v2794_v30, %v2793_v18  ;;  %v2144_v39 = vadd.f32 %v2904_v61, %v1983_v47 }
 0x1d2   : > { %v2796_v52 = vpop.f32.mrf.mxu0  ;;  %v2906_v21 = vpop.f32.mrf.mxu1 }
 0x1d3   : > { %v1988_v44 = vadd.f32 %v2795_v32, %v3940_v34  ;;  %2208 = vst [vmem:[%s3965_s27 + $0xa8] sm:$0xff] %v2144_v39  ;;  %v2907_v17 = vadd.f32 %v2906_v21, %v2905_v42 }
 0x1d4   : > { %v2797_v20 = vpop.f32.mrf.mxu0  ;;  %v2908_v13 = vpop.f32.mrf.mxu1 }
 0x1d5   : > { %v2798_v33 = vadd.f32 %v2797_v20, %v2796_v52  ;;  %v2149_v11 = vadd.f32 %v2907_v17, %v1988_v44 }
 0x1d6   : > { %v2799_v58 = vpop.f32.mrf.mxu0  ;;  %v2909_v22 = vpop.f32.mrf.mxu1 }
 0x1d7   : > { %v1991_v15 = vadd.f32 %v2798_v33, %v3942_v54  ;;  %2209 = vst [vmem:[%s3965_s27 + $0xb0] sm:$0xff] %v2149_v11  ;;  %v2910_v8 = vadd.f32 %v2909_v22, %v2908_v13 }
 0x1d8   : > { %v2800_v9 = vpop.f32.mrf.mxu0  ;;  %v2911_v31 = vpop.f32.mrf.mxu1 }
 0x1d9   : > { %v2801_v41 = vadd.f32 %v2800_v9, %v2799_v58  ;;  %v2152_v34 = vadd.f32 %v2910_v8, %v1991_v15 }
 0x1da   : > { %v2802_v48 = vpop.f32.mrf.mxu0  ;;  %v2912_v62 = vpop.f32.mrf.mxu1 }
 0x1db   : > { %v1996_v4 = vadd.f32 %v2801_v41, %v3944_v53  ;;  %2210 = vst [vmem:[%s3965_s27 + $0xb8] sm:$0xff] %v2152_v34  ;;  %v2913_v3 = vadd.f32 %v2912_v62, %v2911_v31 }
 0x1dc   : > { %v2803_v24 = vpop.f32.mrf.mxu0  ;;  %v2914_v60 = vpop.f32.mrf.mxu1 }
 0x1dd   : > { %v2804_v57 = vadd.f32 %v2803_v24, %v2802_v48  ;;  %v2157_v54 = vadd.f32 %v2913_v3, %v1996_v4 }
 0x1de   : > { %v2805_v1 = vpop.f32.mrf.mxu0  ;;  %v2915_v6 = vpop.f32.mrf.mxu1 }
 0x1df   : > { %v1999_v7 = vadd.f32 %v2804_v57, %v3946_v36  ;;  %2211 = vst [vmem:[%s3965_s27 + $0xc0] sm:$0xff] %v2157_v54  ;;  %v2916_v45 = vadd.f32 %v2915_v6, %v2914_v60 }
 0x1e0   : > { %v2806_v5 = vpop.f32.mrf.mxu0  ;;  %v2917_v50 = vpop.f32.mrf.mxu1 }
 0x1e1   : > { %v2807_v40 = vadd.f32 %v2806_v5, %v2805_v1  ;;  %v2160_v53 = vadd.f32 %v2916_v45, %v1999_v7 }
 0x1e2   : > { %v2808_v43 = vpop.f32.mrf.mxu0  ;;  %v2918_v63 = vpop.f32.mrf.mxu1 }
 0x1e3   : > { %v2004_v23 = vadd.f32 %v2807_v40, %v3948_v37  ;;  %2212 = vst [vmem:[%s3965_s27 + $0xc8] sm:$0xff] %v2160_v53  ;;  %v2919_v2 = vadd.f32 %v2918_v63, %v2917_v50 }
 0x1e4   : > { %v2809_v27 = vpop.f32.mrf.mxu0  ;;  %v2920_v56 = vpop.f32.mrf.mxu1 }
 0x1e5   : > { %v2810_v51 = vadd.f32 %v2809_v27, %v2808_v43  ;;  %v2165_v36 = vadd.f32 %v2919_v2, %v2004_v23 }
 0x1e6   : > { %v2811_v28 = vpop.f32.mrf.mxu0  ;;  %v2921_v35 = vpop.f32.mrf.mxu1 }
 0x1e7   : > { %v2007_v46 = vadd.f32 %v2810_v51, %v3950_v49  ;;  %2213 = vst [vmem:[%s3965_s27 + $0xd0] sm:$0xff] %v2165_v36  ;;  %v2922_v18 = vadd.f32 %v2921_v35, %v2920_v56 }
 0x1e8   : > { %v2812_v10 = vpop.f32.mrf.mxu0  ;;  %v2923_v29 = vpop.f32.mrf.mxu1 }
 0x1e9   : > { %v2813_v25 = vadd.f32 %v2812_v10, %v2811_v28  ;;  %v2168_v37 = vadd.f32 %v2922_v18, %v2007_v46 }
 0x1ea   : > { %v2814_v26 = vpop.f32.mrf.mxu0  ;;  %v2924_v47 = vpop.f32.mrf.mxu1 }
 0x1eb   : > { %v2012_v30 = vadd.f32 %v2813_v25, %v3952_v38  ;;  %2214 = vst [vmem:[%s3965_s27 + $0xd8] sm:$0xff] %v2168_v37  ;;  %v2925_v32 = vadd.f32 %v2924_v47, %v2923_v29 }
 0x1ec   : > { %v2815_v59 = vpop.f32.mrf.mxu0  ;;  %v2926_v12 = vpop.f32.mrf.mxu1 }
 0x1ed   : > { %v2816_v19 = vadd.f32 %v2815_v59, %v2814_v26  ;;  %v2173_v49 = vadd.f32 %v2925_v32, %v2012_v30 }
 0x1ee   : > { %v2817_v14 = vpop.f32.mrf.mxu0  ;;  %v2927_v39 = vpop.f32.mrf.mxu1 }
 0x1ef   : > { %v2015_v61 = vadd.f32 %v2816_v19, %v3954_v0  ;;  %2215 = vst [vmem:[%s3965_s27 + $0xe0] sm:$0xff] %v2173_v49  ;;  %v2928_v44 = vadd.f32 %v2927_v39, %v2926_v12 }
 0x1f0   : > { %v2818_v52 = vpop.f32.mrf.mxu0  ;;  %v2929_v33 = vpop.f32.mrf.mxu1 }
 0x1f1   : > { %v2819_v20 = vadd.f32 %v2818_v52, %v2817_v14  ;;  %v2176_v58 = vadd.f32 %v2928_v44, %v2015_v61 }
 0x1f2   : > { %v2820_v42 = vpop.f32.mrf.mxu0  ;;  %v2930_v9 = vpop.f32.mrf.mxu1 }
 0x1f3   : > { %v2020_v21 = vadd.f32 %v2819_v20, %v3956_v55  ;;  %2216 = vst [vmem:[%s3965_s27 + $0xe8] sm:$0xff] %v2176_v58  ;;  %v2931_v13 = vadd.f32 %v2930_v9, %v2929_v33 }
 0x1f4   : > { %v2821_v38 = vpop.f32.mrf.mxu0  ;;  %v2932_v0 = vpop.f32.mrf.mxu1 }
 0x1f5   : > { %v2822_v17 = vadd.f32 %v2821_v38, %v2820_v42  ;;  %v2181_v11 = vadd.f32 %v2931_v13, %v2020_v21 }
 0x1f6   : > { %v2933_v41 = vpop.f32.mrf.mxu1 }
 0x1f7   : > { %v2023_v15 = vadd.f32 %v2822_v17, %v3959_v16  ;;  %2217 = vst [vmem:[%s3965_s27 + $0xf0] sm:$0xff] %v2181_v11  ;;  %v2934_v48 = vadd.f32 %v2933_v41, %v2932_v0 }
 0x1f9   : > { %v2184_v55 = vadd.f32 %v2934_v48, %v2023_v15 }
 0x1fb   : > { %2218 = vst [vmem:[%s3965_s27 + $0xf8] sm:$0xff] %v2184_v55 }
 0x1fc   : > { %3157 = shalt.err (!%p3154_p5)
}
 0x1fd   : > { %s3158_s18 = scalar_lea.hbm %s4033_s6, 4096  ;;  %s3162_s21 = scalar_lea.hbm %s4088_s3, 8192 }
 0x1fe   : > { %p3159_p6 = scmp.ne.s32.totalorder %s4033_s6, %s3158_s18  ;;  %p3163_p10 = scmp.lt.s32.totalorder %s4033_s6, %s4088_s3 }
 0x1ff   : > { %p3164_p11 = scmp.lt.s32.totalorder %s3162_s21, %s3158_s18 }
 0x200   : > { %p3160_p7 = pnand %p3159_p6, %p3285_p4 }
 0x201   : > { %p3165_p12 = por %p3164_p11, %p3163_p10 }
 0x202   : > { %p3161_p9 = pneg %p3160_p7 }
 0x204   : > { %p3166_p13 = pnand %p3165_p12, %p3161_p9 }
 0x206   : > { %3169 = shalt.err (!%p3166_p13)
}
 0x207   : > { %s3223_s30 = smov 128   ;;  %s3224_s27 = smov 8  }
 0x208   : > { %2937 = dma.vmem_to_hbm [thread:$0]  (%p3285_p4), %s4035_s29, 4096, %s4033_s6, %s4040_s8, %s3223_s30, %s3223_s30, %s3224_s27  }
 0x209 PF: > { %p2944_p0 = scmp.ge.s32.totalorder %s3220_s17, 2  ;;  %s2251_s28 = sand.u32 1, %s3200_s12  }
 0x20a   : > { %s2252_s4 = scalar_lea.sflag [#allocation3], %s2251_s28 }
 0x20b   : > { %p2940_p1 = pnand %p2944_p0, %p3292_p8 }
 0x20d   : > { %p2941_p2 = pneg %p2940_p1 }
 0x20f   : > { %3195 = dma.done.wait (%p2941_p2), %s2252_s4, 4096  }
 0x210   : > { %3197 = vsyncadd (%p2941_p2), %s2252_s4, 4294963200  ;;  %s16_s17 = sadd.s32 1, %s3220_s17   ;;  %s4121_s12 = smov %s3204_s13 }
 0x211   : > { %p13_p3 = scmp.ge.s32.totalorder %s16_s17, 4   ;;  %s4122_s13 = smov %s3208_s14 }
 0x212   : > { %s4123_s14 = smov %s3298_s25  ;;  %s4124_s15 = smov %s3216_s16 }
 0x213   : > { %s4125_s16 = smov %s4127_s20  ;;  %15 = sbr.rel (!%p13_p3) target bundleno = 4 (0x4), region = 70 }
 0x218   :  { %2257 = vsyncpa [#allocation3], 1 }
 0x219   :  { %2259 = vsyncpa [#allocation3 + $0x1], 1 }

</bundles_post_ra>
